<compile_context>
chip_gen: v7x
topology: tpu7x:2x2x1
jax: 0.10.0
libtpu: 0.0.40
codegen_flags: <defaults>
</compile_context>

<pallas_src>
import functools

import jax
import jax.numpy as jnp
from jax import lax
from jax.experimental import pallas as pl
from jax.experimental.pallas import tpu as pltpu


# Tap order matches the row-major (ki, kj) order of an HWIO 3x3 kernel reshaped to (9*C, C).
_TAPS = tuple((di, dj) for di in (-1, 0, 1) for dj in (-1, 0, 1))


def _round_up(x, m):
    return (x + m - 1) // m * m


def _bottleneck_kernel(x_ref, w1_ref, b1_ref, w2_ref, b2_ref, w3_ref, b3_ref, o_ref, *, H, W):
    """One grid step = nb batch elements:
       conv1(1x1)+bn1+relu, conv2(3x3)+bn2+relu, conv3(1x1)+bn3 with the dual-path merge
       folded into w3'/b3', final ReLU.  BN scales are pre-folded into the weights."""
    nb = x_ref.shape[0]
    Cin = x_ref.shape[3]
    Cpad = o_ref.shape[3]
    wp = w1_ref.shape[1]          # padded width (multiple of 128)
    M = nb * H * W

    xf = x_ref[...].reshape(M, Cin)                                   # f32, exact identity source

    # conv1 (1x1, BN1 scale folded into w1) + bias + ReLU.  bf16 operands, f32 accumulate.
    h1 = jnp.dot(xf.astype(jnp.bfloat16), w1_ref[...], preferred_element_type=jnp.float32)
    h1 = jnp.maximum(h1 + b1_ref[...], 0.0)                           # (M, wp) f32

    # conv2 (3x3, stride 1, pad 1): roll-shifted taps + in-kernel iota boundary masks,
    # assembled into one lane-dense im2col operand -> a single K = 9*wp MXU matmul.
    # For tap (di, dj): shifted[m] = h1[m + di*W + dj]; rows whose (i+di, j+dj) falls
    # outside the image (incl. wrap-around / batch seams) are zeroed by the mask.
    ii = lax.broadcasted_iota(jnp.int32, (nb, H, W, 1), 1).reshape(M, 1)
    jj = lax.broadcasted_iota(jnp.int32, (nb, H, W, 1), 2).reshape(M, 1)
    row_ok = {-1: ii >= 1, 0: None, 1: ii <= H - 2}
    col_ok = {-1: jj >= 1, 0: None, 1: jj <= W - 2}

    taps = []
    for di, dj in _TAPS:
        shift = di * W + dj
        src = h1 if shift == 0 else pltpu.roll(h1, shift=(-shift) % M, axis=0)
        conds = [c for c in (row_ok[di], col_ok[dj]) if c is not None]
        if conds:
            ok = conds[0] if len(conds) == 1 else (conds[0] & conds[1])
            src = jnp.where(ok, src, 0.0)                             # f32 select (v5e-safe)
        taps.append(src.astype(jnp.bfloat16))                         # per-tap bf16 cast
    im2col = jnp.concatenate(taps, axis=-1)                           # (M, 9*wp) bf16, lane-aligned
    h2 = jnp.dot(im2col, w2_ref[...], preferred_element_type=jnp.float32)
    h2 = jnp.maximum(h2 + b2_ref[...], 0.0).astype(jnp.bfloat16)      # (M, wp)

    # conv3 (1x1) + bn3 with the dual-path merge folded into the w3'/b3' columns:
    #   out = relu(h2 @ w3' + b3' + [identity | 0])   -- no concat / channel slicing of h3.
    h3 = jnp.dot(h2, w3_ref[...], preferred_element_type=jnp.float32)
    if Cpad > Cin:
        ident = jnp.concatenate([xf, jnp.zeros((M, Cpad - Cin), jnp.float32)], axis=-1)
    else:
        ident = xf
    out = jnp.maximum(h3 + b3_ref[...] + ident, 0.0)                  # (M, Cpad) f32
    o_ref[...] = out.reshape(nb, H, W, Cpad).astype(o_ref.dtype)      # 128-lane-dense store


def prepare_params(params, *, inplanes, out_planes, dense_depth):
    """Host-side one-time parameter transform:
       fold BN scales into conv weights, fold the dual-path merge into the conv3 columns,
       pad width and output channels to multiples of 128 (lane-dense), cast weights to bf16."""
    w1, s1, b1, w2, s2, b2, w3, s3, b3 = params
    Cin, width = w1.shape
    assert Cin == inplanes and Cin >= out_planes
    d, dd = out_planes, dense_depth
    Cout = Cin + dd
    Cpad = max(128, _round_up(Cout, 128))
    wp = max(128, _round_up(width, 128))

    # conv1: fold BN1 scale, pad output channels to wp.
    w1p = jnp.zeros((Cin, wp), jnp.float32).at[:, :width].set(w1 * s1)
    b1p = jnp.zeros((1, wp), jnp.float32).at[:, :width].set(b1)

    # conv2: fold BN2 scale, pad I and O to wp, reshape HWIO (3,3,wp,wp) -> (9*wp, wp).
    w2p = jnp.zeros((3, 3, wp, wp), jnp.float32).at[:, :, :width, :width].set(w2 * s2)
    w2p = w2p.reshape(9 * wp, wp)
    b2p = jnp.zeros((1, wp), jnp.float32).at[:, :width].set(b2)

    # conv3: fold BN3 scale; residual columns [:d] add onto the identity channels, dense
    # columns appended after the identity block at [Cin:Cout]; padded rows/cols are zero.
    w3f = w3 * s3
    w3m = jnp.zeros((wp, Cpad), jnp.float32)
    w3m = w3m.at[:width, :d].set(w3f[:, :d])
    w3m = w3m.at[:width, Cin:Cout].set(w3f[:, d:])
    b3m = jnp.zeros((1, Cpad), jnp.float32)
    b3m = b3m.at[:, :d].set(b3[:, :d])
    b3m = b3m.at[:, Cin:Cout].set(b3[:, d:])

    return (w1p.astype(jnp.bfloat16), b1p,
            w2p.astype(jnp.bfloat16), b2p,
            w3m.astype(jnp.bfloat16), b3m)


def _step_vmem_bytes(nb, H, W, Cin, Cpad, wp, out_bytes):
    """Rough per-grid-step VMEM estimate (blocks + kernel temps)."""
    M = nb * H * W
    x_blk = 2 * M * Cin * 4                      # double-buffered input block
    o_blk = 2 * M * Cpad * out_bytes             # double-buffered output block
    wts = 2 * (Cin * wp + 9 * wp * wp + wp * Cpad) + 4 * (2 * wp + 2 * Cpad)  # Buffered(1)
    tmp = M * (wp * 4            # h1 f32
               + wp * 4          # rolled/masked tap transient
               + 9 * wp * 2      # bf16 im2col
               + wp * 2          # h2 bf16
               + Cpad * 4        # identity (zero-extended) f32
               + Cpad * 4)       # out f32
    return x_blk + o_blk + wts + tmp


def _pick_batch_block(N, H, W, Cin, Cpad, wp, out_bytes, budget=24 << 20):
    """Largest divisor of N that (a) keeps >=2 grid steps when possible (pipelining + both
       v7x TensorCores) and (b) fits the VMEM budget (conservative for v7x's 64 MiB)."""
    best = 1
    best_bytes = _step_vmem_bytes(1, H, W, Cin, Cpad, wp, out_bytes)
    for nb in range(1, N + 1):
        if N % nb:
            continue
        if N >= 2 and N // nb < 2:
            continue
        sb = _step_vmem_bytes(nb, H, W, Cin, Cpad, wp, out_bytes)
        if sb <= budget:
            best, best_bytes = nb, sb
    return best, best_bytes


@functools.partial(jax.jit, static_argnames=("dense_depth", "batch_block", "out_dtype"))
def dpn_bottleneck(x_nchw, prepared, *, dense_depth, batch_block=None, out_dtype=jnp.float32):
    """NCHW in / NCHW out wrapper.  out_dtype=jnp.bfloat16 halves the kernel writeback
       (recommended on v5e/v6e); default f32 keeps the identity path exact."""
    w1p, b1p, w2p, b2p, w3m, b3m = prepared
    N, Cin, H, W = x_nchw.shape
    Cout = Cin + dense_depth
    wp = w1p.shape[1]
    Cpad = w3m.shape[1]
    out_bytes = jnp.dtype(out_dtype).itemsize

    # NCHW -> NHWC once at the block boundary.
    # TODO(synk): keep activations NHWC across adjacent DPN blocks so this transpose happens
    #             only at network boundaries.
    x = jnp.transpose(x_nchw, (0, 2, 3, 1))

    if batch_block is None:
        nb, step_bytes = _pick_batch_block(N, H, W, Cin, Cpad, wp, out_bytes)
    else:
        nb = batch_block
        step_bytes = _step_vmem_bytes(nb, H, W, Cin, Cpad, wp, out_bytes)
    assert N % nb == 0

    def const_spec(shape):
        nd = len(shape)
        return pl.BlockSpec(shape, lambda n, _nd=nd: (0,) * _nd,
                            pipeline_mode=pl.Buffered(1))   # grid-invariant -> single buffer

    M_total = N * H * W
    flops = 2 * M_total * (Cin * wp + 9 * wp * wp + wp * Cpad)
    bytes_accessed = (M_total * Cin * 4 + M_total * Cpad * out_bytes
                      + 2 * (Cin * wp + 9 * wp * wp + wp * Cpad) + 4 * (2 * wp + 2 * Cpad))

    kernel = functools.partial(_bottleneck_kernel, H=H, W=W)
    out = pl.pallas_call(
        kernel,
        out_shape=jax.ShapeDtypeStruct((N, H, W, Cpad), out_dtype),
        grid=(N // nb,),
        in_specs=[
            pl.BlockSpec((nb, H, W, Cin), lambda n: (n, 0, 0, 0)),
            const_spec(w1p.shape), const_spec(b1p.shape),
            const_spec(w2p.shape), const_spec(b2p.shape),
            const_spec(w3m.shape), const_spec(b3m.shape),
        ],
        out_specs=pl.BlockSpec((nb, H, W, Cpad), lambda n: (n, 0, 0, 0)),
        compiler_params=pltpu.CompilerParams(
            dimension_semantics=("parallel",),
            vmem_limit_bytes=int(min(48 << 20, max(32 << 20, 2 * step_bytes)))),
        cost_estimate=pl.CostEstimate(flops=int(flops), transcendentals=0,
                                      bytes_accessed=int(bytes_accessed)),
    )(x, w1p, b1p, w2p, b2p, w3m, b3m)

    out = out[..., :Cout]                                             # drop lane padding
    if out_dtype != jnp.float32:
        out = out.astype(jnp.float32)
    return jnp.transpose(out, (0, 3, 1, 2))                           # NHWC -> NCHW


def reference(x_nchw, params, *, out_planes, dense_depth):
    """Pure-JAX f32 reference (mirrors the PyTorch forward), NCHW in / NCHW out."""
    w1, s1, b1, w2, s2, b2, w3, s3, b3 = params
    hi = jax.lax.Precision.HIGHEST
    x = jnp.transpose(x_nchw, (0, 2, 3, 1))
    h = jnp.einsum('nhwc,cd->nhwd', x, w1, precision=hi)
    h = jnp.maximum(h * s1[0] + b1[0], 0.0)
    h = lax.conv_general_dilated(h, w2, (1, 1), 'SAME',
                                 dimension_numbers=('NHWC', 'HWIO', 'NHWC'),
                                 precision=hi)
    h = jnp.maximum(h * s2[0] + b2[0], 0.0)
    h = jnp.einsum('nhwc,cd->nhwd', h, w3, precision=hi)
    h = h * s3[0] + b3[0]
    d = out_planes
    out = jnp.concatenate([x[..., :d] + h[..., :d], x[..., d:], h[..., d:]], axis=-1)
    out = jnp.maximum(out, 0.0)
    return jnp.transpose(out, (0, 3, 1, 2))


def make_params(key, inplanes, planes, out_planes, dense_depth, groups=1, base_width=64):
    width = int(planes * (base_width / 64.0)) * groups
    c3 = out_planes + dense_depth
    eps = 1e-5
    ks = jax.random.split(key, 15)

    def bn_fold(kg, kb, km, kv, c):
        gamma = jax.random.uniform(kg, (1, c), jnp.float32, 0.5, 1.5)
        beta = 0.1 * jax.random.normal(kb, (1, c), jnp.float32)
        mean = 0.1 * jax.random.normal(km, (1, c), jnp.float32)
        var = jax.random.uniform(kv, (1, c), jnp.float32, 0.5, 1.5)
        scale = gamma / jnp.sqrt(var + eps)
        bias = beta - mean * scale
        return scale, bias

    w1 = 0.1 * jax.random.normal(ks[0], (inplanes, width), jnp.float32)       # 1x1: (Cin, Cout)
    w2 = 0.1 * jax.random.normal(ks[1], (3, 3, width, width), jnp.float32)    # 3x3: HWIO
    w3 = 0.1 * jax.random.normal(ks[2], (width, c3), jnp.float32)             # 1x1: (Cin, Cout)
    s1, b1 = bn_fold(ks[3], ks[4], ks[5], ks[6], width)
    s2, b2 = bn_fold(ks[7], ks[8], ks[9], ks[10], width)
    s3, b3 = bn_fold(ks[11], ks[12], ks[13], ks[14], c3)
    return (w1, s1, b1, w2, s2, b2, w3, s3, b3)


if __name__ == "__main__":
    # Small DPN-style config: inplanes=32, planes=16 (width=16), out_planes=24, dense_depth=8
    N, inplanes, H, W = 2, 32, 16, 16
    planes, out_planes, dense_depth = 16, 24, 8

    key = jax.random.PRNGKey(0)
    kx, kp = jax.random.split(key)
    x = jax.random.normal(kx, (N, inplanes, H, W), jnp.float32)   # PyTorch-style NCHW input
    params = make_params(kp, inplanes, planes, out_planes, dense_depth)
    prepared = prepare_params(params, inplanes=inplanes, out_planes=out_planes,
                              dense_depth=dense_depth)

    out = dpn_bottleneck(x, prepared, dense_depth=dense_depth)   # nb heuristic -> grid of 2
    out = jax.block_until_ready(out)

    ref = reference(x, params, out_planes=out_planes, dense_depth=dense_depth)
    assert out.shape == (N, inplanes + dense_depth, H, W), out.shape
    # bf16 MXU operands vs. an f32 HIGHEST-precision reference -> slightly wider tolerance.
    assert jnp.allclose(out, ref, atol=2e-2, rtol=2e-2), float(jnp.max(jnp.abs(out - ref)))

    print("KERNEL_OK")
</pallas_src>

<mosaic_0001>
module attributes {stable_mosaic.version = 11 : i64} {
  func.func @_bottleneck_kernel(%arg0: i32, %arg1: memref<1x16x16x32xf32, #tpu.memory_space<vmem>>, %arg2: memref<32x128xbf16, #tpu.memory_space<vmem>>, %arg3: memref<1x128xf32, #tpu.memory_space<vmem>>, %arg4: memref<1152x128xbf16, #tpu.memory_space<vmem>>, %arg5: memref<1x128xf32, #tpu.memory_space<vmem>>, %arg6: memref<128x128xbf16, #tpu.memory_space<vmem>>, %arg7: memref<1x128xf32, #tpu.memory_space<vmem>>, %arg8: memref<1x16x16x128xf32, #tpu.memory_space<vmem>>) attributes {dimension_semantics = [#tpu.dimension_semantics<parallel>], iteration_bounds = array<i64: 2>, scalar_prefetch = 0 : i64, scratch_operands = 0 : i64, tpu.core_type = #tpu.core_type<tc>, window_params = [{transform_indices = @transform_0, window_bounds = array<i64: 1, 16, 16, 32>}, {pipeline_mode = #tpu.pipeline_mode<synchronous>, transform_indices = @transform_1, window_bounds = array<i64: 32, 128>}, {pipeline_mode = #tpu.pipeline_mode<synchronous>, transform_indices = @transform_2, window_bounds = array<i64: 1, 128>}, {pipeline_mode = #tpu.pipeline_mode<synchronous>, transform_indices = @transform_3, window_bounds = array<i64: 1152, 128>}, {pipeline_mode = #tpu.pipeline_mode<synchronous>, transform_indices = @transform_4, window_bounds = array<i64: 1, 128>}, {pipeline_mode = #tpu.pipeline_mode<synchronous>, transform_indices = @transform_5, window_bounds = array<i64: 128, 128>}, {pipeline_mode = #tpu.pipeline_mode<synchronous>, transform_indices = @transform_6, window_bounds = array<i64: 1, 128>}, {transform_indices = @transform_7, window_bounds = array<i64: 1, 16, 16, 128>}]} {
    %c0 = arith.constant 0 : index
    %c0_0 = arith.constant 0 : index
    %c0_1 = arith.constant 0 : index
    %c0_2 = arith.constant 0 : index
    %0 = vector.load %arg1[%c0, %c0_0, %c0_1, %c0_2] : memref<1x16x16x32xf32, #tpu.memory_space<vmem>>, vector<1x16x16x32xf32>
    %1 = vector.shape_cast %0 : vector<1x16x16x32xf32> to vector<256x32xf32>
    %2 = arith.truncf %1 : vector<256x32xf32> to vector<256x32xbf16>
    %c0_3 = arith.constant 0 : index
    %c0_4 = arith.constant 0 : index
    %3 = vector.load %arg2[%c0_3, %c0_4] : memref<32x128xbf16, #tpu.memory_space<vmem>>, vector<32x128xbf16>
    %cst = arith.constant dense<0.000000e+00> : vector<256x128xf32>
    %4 = tpu.matmul %2, %3, %cst {dimension_numbers = #tpu.dot_dimension_numbers<[1], [0], [0], [1], [0, 0, 1, 1], [], []>} : vector<256x32xbf16>, vector<32x128xbf16>, vector<256x128xf32> -> vector<256x128xf32>
    %c0_5 = arith.constant 0 : index
    %c0_6 = arith.constant 0 : index
    %5 = vector.load %arg3[%c0_5, %c0_6] : memref<1x128xf32, #tpu.memory_space<vmem>>, vector<1x128xf32>
    %6 = vector.broadcast %5 : vector<1x128xf32> to vector<256x128xf32>
    %7 = arith.addf %4, %6 : vector<256x128xf32>
    %cst_7 = arith.constant 0.000000e+00 : f32
    %8 = vector.broadcast %cst_7 : f32 to vector<256x128xf32>
    %9 = arith.maximumf %7, %8 : vector<256x128xf32>
    %10 = tpu.iota {dimensions = array<i32: 1>} : vector<1x16x16x1xi32>
    %11 = vector.shape_cast %10 : vector<1x16x16x1xi32> to vector<256x1xi32>
    %12 = tpu.iota {dimensions = array<i32: 2>} : vector<1x16x16x1xi32>
    %13 = vector.shape_cast %12 : vector<1x16x16x1xi32> to vector<256x1xi32>
    %c1_i32 = arith.constant 1 : i32
    %14 = vector.broadcast %c1_i32 : i32 to vector<256x1xi32>
    %15 = arith.cmpi sge, %11, %14 : vector<256x1xi32>
    %c14_i32 = arith.constant 14 : i32
    %16 = vector.broadcast %c14_i32 : i32 to vector<256x1xi32>
    %17 = arith.cmpi sle, %11, %16 : vector<256x1xi32>
    %c1_i32_8 = arith.constant 1 : i32
    %18 = vector.broadcast %c1_i32_8 : i32 to vector<256x1xi32>
    %19 = arith.cmpi sge, %13, %18 : vector<256x1xi32>
    %c14_i32_9 = arith.constant 14 : i32
    %20 = vector.broadcast %c14_i32_9 : i32 to vector<256x1xi32>
    %21 = arith.cmpi sle, %13, %20 : vector<256x1xi32>
    %c17_i32 = arith.constant 17 : i32
    %22 = tpu.dynamic_rotate %9 by %c17_i32 dim 0 : vector<256x128xf32>, i32 -> vector<256x128xf32>
    %23 = arith.andi %15, %19 : vector<256x1xi1>
    %cst_10 = arith.constant 0.000000e+00 : f32
    %24 = vector.shape_cast %23 : vector<256x1xi1> to vector<256x1xi1>
    %25 = vector.broadcast %24 : vector<256x1xi1> to vector<256x128xi1>
    %26 = vector.broadcast %cst_10 : f32 to vector<256x128xf32>
    %27 = arith.select %25, %22, %26 : vector<256x128xi1>, vector<256x128xf32>
    %28 = arith.truncf %27 : vector<256x128xf32> to vector<256x128xbf16>
    %c16_i32 = arith.constant 16 : i32
    %29 = tpu.dynamic_rotate %9 by %c16_i32 dim 0 : vector<256x128xf32>, i32 -> vector<256x128xf32>
    %cst_11 = arith.constant 0.000000e+00 : f32
    %30 = vector.shape_cast %15 : vector<256x1xi1> to vector<256x1xi1>
    %31 = vector.broadcast %30 : vector<256x1xi1> to vector<256x128xi1>
    %32 = vector.broadcast %cst_11 : f32 to vector<256x128xf32>
    %33 = arith.select %31, %29, %32 : vector<256x128xi1>, vector<256x128xf32>
    %34 = arith.truncf %33 : vector<256x128xf32> to vector<256x128xbf16>
    %c15_i32 = arith.constant 15 : i32
    %35 = tpu.dynamic_rotate %9 by %c15_i32 dim 0 : vector<256x128xf32>, i32 -> vector<256x128xf32>
    %36 = arith.andi %15, %21 : vector<256x1xi1>
    %cst_12 = arith.constant 0.000000e+00 : f32
    %37 = vector.shape_cast %36 : vector<256x1xi1> to vector<256x1xi1>
    %38 = vector.broadcast %37 : vector<256x1xi1> to vector<256x128xi1>
    %39 = vector.broadcast %cst_12 : f32 to vector<256x128xf32>
    %40 = arith.select %38, %35, %39 : vector<256x128xi1>, vector<256x128xf32>
    %41 = arith.truncf %40 : vector<256x128xf32> to vector<256x128xbf16>
    %c1_i32_13 = arith.constant 1 : i32
    %42 = tpu.dynamic_rotate %9 by %c1_i32_13 dim 0 : vector<256x128xf32>, i32 -> vector<256x128xf32>
    %cst_14 = arith.constant 0.000000e+00 : f32
    %43 = vector.shape_cast %19 : vector<256x1xi1> to vector<256x1xi1>
    %44 = vector.broadcast %43 : vector<256x1xi1> to vector<256x128xi1>
    %45 = vector.broadcast %cst_14 : f32 to vector<256x128xf32>
    %46 = arith.select %44, %42, %45 : vector<256x128xi1>, vector<256x128xf32>
    %47 = arith.truncf %46 : vector<256x128xf32> to vector<256x128xbf16>
    %48 = arith.truncf %9 : vector<256x128xf32> to vector<256x128xbf16>
    %c255_i32 = arith.constant 255 : i32
    %49 = tpu.dynamic_rotate %9 by %c255_i32 dim 0 : vector<256x128xf32>, i32 -> vector<256x128xf32>
    %cst_15 = arith.constant 0.000000e+00 : f32
    %50 = vector.shape_cast %21 : vector<256x1xi1> to vector<256x1xi1>
    %51 = vector.broadcast %50 : vector<256x1xi1> to vector<256x128xi1>
    %52 = vector.broadcast %cst_15 : f32 to vector<256x128xf32>
    %53 = arith.select %51, %49, %52 : vector<256x128xi1>, vector<256x128xf32>
    %54 = arith.truncf %53 : vector<256x128xf32> to vector<256x128xbf16>
    %c241_i32 = arith.constant 241 : i32
    %55 = tpu.dynamic_rotate %9 by %c241_i32 dim 0 : vector<256x128xf32>, i32 -> vector<256x128xf32>
    %56 = arith.andi %17, %19 : vector<256x1xi1>
    %cst_16 = arith.constant 0.000000e+00 : f32
    %57 = vector.shape_cast %56 : vector<256x1xi1> to vector<256x1xi1>
    %58 = vector.broadcast %57 : vector<256x1xi1> to vector<256x128xi1>
    %59 = vector.broadcast %cst_16 : f32 to vector<256x128xf32>
    %60 = arith.select %58, %55, %59 : vector<256x128xi1>, vector<256x128xf32>
    %61 = arith.truncf %60 : vector<256x128xf32> to vector<256x128xbf16>
    %c240_i32 = arith.constant 240 : i32
    %62 = tpu.dynamic_rotate %9 by %c240_i32 dim 0 : vector<256x128xf32>, i32 -> vector<256x128xf32>
    %cst_17 = arith.constant 0.000000e+00 : f32
    %63 = vector.shape_cast %17 : vector<256x1xi1> to vector<256x1xi1>
    %64 = vector.broadcast %63 : vector<256x1xi1> to vector<256x128xi1>
    %65 = vector.broadcast %cst_17 : f32 to vector<256x128xf32>
    %66 = arith.select %64, %62, %65 : vector<256x128xi1>, vector<256x128xf32>
    %67 = arith.truncf %66 : vector<256x128xf32> to vector<256x128xbf16>
    %c239_i32 = arith.constant 239 : i32
    %68 = tpu.dynamic_rotate %9 by %c239_i32 dim 0 : vector<256x128xf32>, i32 -> vector<256x128xf32>
    %69 = arith.andi %17, %21 : vector<256x1xi1>
    %cst_18 = arith.constant 0.000000e+00 : f32
    %70 = vector.shape_cast %69 : vector<256x1xi1> to vector<256x1xi1>
    %71 = vector.broadcast %70 : vector<256x1xi1> to vector<256x128xi1>
    %72 = vector.broadcast %cst_18 : f32 to vector<256x128xf32>
    %73 = arith.select %71, %68, %72 : vector<256x128xi1>, vector<256x128xf32>
    %74 = arith.truncf %73 : vector<256x128xf32> to vector<256x128xbf16>
    %75 = tpu.concatenate %28, %34, %41, %47, %48, %54, %61, %67, %74 in 1 : vector<256x128xbf16>, vector<256x128xbf16>, vector<256x128xbf16>, vector<256x128xbf16>, vector<256x128xbf16>, vector<256x128xbf16>, vector<256x128xbf16>, vector<256x128xbf16>, vector<256x128xbf16> -> vector<256x1152xbf16>
    %c0_19 = arith.constant 0 : index
    %c0_20 = arith.constant 0 : index
    %76 = vector.load %arg4[%c0_19, %c0_20] : memref<1152x128xbf16, #tpu.memory_space<vmem>>, vector<1152x128xbf16>
    %cst_21 = arith.constant dense<0.000000e+00> : vector<256x128xf32>
    %77 = tpu.matmul %75, %76, %cst_21 {dimension_numbers = #tpu.dot_dimension_numbers<[1], [0], [0], [1], [0, 0, 1, 1], [], []>} : vector<256x1152xbf16>, vector<1152x128xbf16>, vector<256x128xf32> -> vector<256x128xf32>
    %c0_22 = arith.constant 0 : index
    %c0_23 = arith.constant 0 : index
    %78 = vector.load %arg5[%c0_22, %c0_23] : memref<1x128xf32, #tpu.memory_space<vmem>>, vector<1x128xf32>
    %79 = vector.broadcast %78 : vector<1x128xf32> to vector<256x128xf32>
    %80 = arith.addf %77, %79 : vector<256x128xf32>
    %cst_24 = arith.constant 0.000000e+00 : f32
    %81 = vector.broadcast %cst_24 : f32 to vector<256x128xf32>
    %82 = arith.maximumf %80, %81 : vector<256x128xf32>
    %83 = arith.truncf %82 : vector<256x128xf32> to vector<256x128xbf16>
    %c0_25 = arith.constant 0 : index
    %c0_26 = arith.constant 0 : index
    %84 = vector.load %arg6[%c0_25, %c0_26] : memref<128x128xbf16, #tpu.memory_space<vmem>>, vector<128x128xbf16>
    %cst_27 = arith.constant dense<0.000000e+00> : vector<256x128xf32>
    %85 = tpu.matmul %83, %84, %cst_27 {dimension_numbers = #tpu.dot_dimension_numbers<[1], [0], [0], [1], [0, 0, 1, 1], [], []>} : vector<256x128xbf16>, vector<128x128xbf16>, vector<256x128xf32> -> vector<256x128xf32>
    %cst_28 = arith.constant 0.000000e+00 : f32
    %86 = vector.broadcast %cst_28 : f32 to vector<256x96xf32>
    %87 = tpu.concatenate %1, %86 in 1 : vector<256x32xf32>, vector<256x96xf32> -> vector<256x128xf32>
    %c0_29 = arith.constant 0 : index
    %c0_30 = arith.constant 0 : index
    %88 = vector.load %arg7[%c0_29, %c0_30] : memref<1x128xf32, #tpu.memory_space<vmem>>, vector<1x128xf32>
    %89 = vector.broadcast %88 : vector<1x128xf32> to vector<256x128xf32>
    %90 = arith.addf %85, %89 : vector<256x128xf32>
    %91 = arith.addf %90, %87 : vector<256x128xf32>
    %cst_31 = arith.constant 0.000000e+00 : f32
    %92 = vector.broadcast %cst_31 : f32 to vector<256x128xf32>
    %93 = arith.maximumf %91, %92 : vector<256x128xf32>
    %94 = vector.shape_cast %93 : vector<256x128xf32> to vector<1x16x16x128xf32>
    %c0_32 = arith.constant 0 : index
    %c0_33 = arith.constant 0 : index
    %c0_34 = arith.constant 0 : index
    %c0_35 = arith.constant 0 : index
    %95 = vector.load %arg8[%c0_32, %c0_33, %c0_34, %c0_35] : memref<1x16x16x128xf32, #tpu.memory_space<vmem>>, vector<1x16x16x128xf32>
    tpu.vector_store %arg8[%c0_32, %c0_33, %c0_34, %c0_35], %94 {strides = array<i32>} : memref<1x16x16x128xf32, #tpu.memory_space<vmem>>, vector<1x16x16x128xf32>,
    return
  }
  func.func @transform_0(%arg0: i32) -> (i32, i32, i32, i32) {
    %c0_i32 = arith.constant 0 : i32
    %c0_i32_0 = arith.constant 0 : i32
    %c0_i32_1 = arith.constant 0 : i32
    %c0_i32_2 = arith.constant 0 : i32
    return %arg0, %c0_i32, %c0_i32_0, %c0_i32_1 : i32, i32, i32, i32
  }
  func.func @transform_1(%arg0: i32) -> (i32, i32) {
    %c0_i32 = arith.constant 0 : i32
    %c0_i32_0 = arith.constant 0 : i32
    %c0_i32_1 = arith.constant 0 : i32
    return %c0_i32, %c0_i32_0 : i32, i32
  }
  func.func @transform_2(%arg0: i32) -> (i32, i32) {
    %c0_i32 = arith.constant 0 : i32
    %c0_i32_0 = arith.constant 0 : i32
    %c0_i32_1 = arith.constant 0 : i32
    return %c0_i32, %c0_i32_0 : i32, i32
  }
  func.func @transform_3(%arg0: i32) -> (i32, i32) {
    %c0_i32 = arith.constant 0 : i32
    %c0_i32_0 = arith.constant 0 : i32
    %c0_i32_1 = arith.constant 0 : i32
    return %c0_i32, %c0_i32_0 : i32, i32
  }
  func.func @transform_4(%arg0: i32) -> (i32, i32) {
    %c0_i32 = arith.constant 0 : i32
    %c0_i32_0 = arith.constant 0 : i32
    %c0_i32_1 = arith.constant 0 : i32
    return %c0_i32, %c0_i32_0 : i32, i32
  }
  func.func @transform_5(%arg0: i32) -> (i32, i32) {
    %c0_i32 = arith.constant 0 : i32
    %c0_i32_0 = arith.constant 0 : i32
    %c0_i32_1 = arith.constant 0 : i32
    return %c0_i32, %c0_i32_0 : i32, i32
  }
  func.func @transform_6(%arg0: i32) -> (i32, i32) {
    %c0_i32 = arith.constant 0 : i32
    %c0_i32_0 = arith.constant 0 : i32
    %c0_i32_1 = arith.constant 0 : i32
    return %c0_i32, %c0_i32_0 : i32, i32
  }
  func.func @transform_7(%arg0: i32) -> (i32, i32, i32, i32) {
    %c0_i32 = arith.constant 0 : i32
    %c0_i32_0 = arith.constant 0 : i32
    %c0_i32_1 = arith.constant 0 : i32
    %c0_i32_2 = arith.constant 0 : i32
    return %arg0, %c0_i32, %c0_i32_0, %c0_i32_1 : i32, i32, i32, i32
  }
}

</mosaic_0001>

<bundles_post_ra>
// kernel: dpn_bottleneck.1
= control target key start
LH: loop header
LB: loop body
LE: loop exit
PB: predicated region body
PF: predicated region fallthrough
CT: control target
= control target key end

     0   :  { %12 = vsyncpa [#allocation3], 0  ;;  %s5899_s0 = inlined_call_operand.hbm [shape: f32[2,16,16,32], index: 0, kind: input, shape index: {}]   ;;  %s5900_s1 = inlined_call_operand.hbm [shape: bf16[32,128], index: 1, kind: input, shape index: {}]   ;;  %s5901_s2 = inlined_call_operand.vmem [shape: f32[1,128], index: 2, kind: input, shape index: {}]   ;;  %s5902_s3 = inlined_call_operand.hbm [shape: bf16[1152,128], index: 3, kind: input, shape index: {}]   ;;  %s5903_s4 = inlined_call_operand.vmem [shape: f32[1,128], index: 4, kind: input, shape index: {}]   ;;  %s5904_s5 = inlined_call_operand.hbm [shape: bf16[128,128], index: 5, kind: input, shape index: {}]   ;;  %s5905_s6 = inlined_call_operand.vmem [shape: f32[1,128], index: 6, kind: input, shape index: {}]   ;;  %s5906_s7 = inlined_call_operand.vmem [shape: f32[2,16,16,128], index: 7, kind: output, shape index: {}]  }
   0x1   :  { %14 = vsyncpa [#allocation3 + $0x1], 0 }
   0x2   :  { %15 = vsyncpa [#allocation5], 0 }
   0x3   :  { %16 = vsyncpa [#allocation8], 0  ;;  %s4252_s24 = smov 0   ;;  %s4254_s25 = smov 0  }
   0x4   :  { %s4256_s26 = smov 0   ;;  %s4258_s27 = smov 0  }
   0x5 LB: > { %s4271_s28 = sadd.s32 4294967295, %s4200_s27   ;;  %p42_p0 = scmp.ne.s32.totalorder %s4192_s25, %s4188_s24  ;;  %s4200_s27 = sphi %s4258_s27, %s6040_s27   ;;  %s4196_s26 = sphi %s4256_s26, %s6039_s26   ;;  %s4192_s25 = sphi %s4254_s25, %s6038_s25   ;;  %s4188_s24 = sphi %s4252_s24, %s6037_s24  }
   0x6   : > { %p5907_p1 = scmp.eq.s32.totalorder %s4271_s28, 0  ;;  %p2808_p2 = scmp.ge.s32.totalorder %s4200_s27, 1 }
   0x7   : > { %p205_p3 = scmp.lt.s32.totalorder %s4200_s27, 3  ;;  %s4202_s8 = smov [#allocation4]  }
   0x8   : > { %p4279_p4 = por %p5907_p1, %p42_p0  ;;  %s217_s9 = sshll.u32 %s4202_s8, 4  ;;  %s4287_s9 = int_to_ptr.vmem [resolvable:$true] %s217_s9 }
   0x9   : > { %p4283_p5 = pnand %p2808_p2, %p205_p3  ;;  %s4203_s11 = smov [#allocation6]  }
   0xa   : > { %s5922_s29 = scalar_select %p4279_p4, 1, 0 }
   0xb   : > { %s5923_s30 = scalar_select %p4283_p5, 1, 0 }
   0xc   : > { %p3868_p6 = pneg %p4283_p5  ;;  %s233_s12 = sshll.u32 %s4203_s11, 4  ;;  %s4297_s12 = int_to_ptr.vmem [resolvable:$true] %s233_s12 }
   0xd   : > { %s4204_s13 = smov [#allocation7]   ;;  %s4044_s17 = scalar_lea.hbm %s5900_s1, 256 }
   0xe   : > { %p4293_p7 = pnand %p3868_p6, %p5907_p1  ;;  %s4299_s14 = sshll.u32 %s4204_s13, 4  ;;  %s250_s14 = int_to_ptr.vmem [resolvable:$true] %s4299_s14 }
   0xf   : > { %p4045_p8 = scmp.ne.s32.totalorder %s5900_s1, %s4044_s17  ;;  %p4051_p12 = scmp.lt.u32.totalorder %s4044_s17, %s5900_s1 }
  0x10   : > { %p4309_p9 = pneg %p4293_p7 }
  0x12   : > { %p4047_p10 = pnand %p4309_p9, %p4045_p8 }
  0x14   : > { %p4048_p11 = pneg %p4047_p10 }
  0x16   : > { %p4053_p13 = pnand %p4051_p12, %p4048_p11 }
  0x18   : > { %4056 = shalt.err (!%p4053_p13)
}
  0x19   : > { %s4057_s23 = scalar_lea.vmem %s4287_s9, 256  ;;  %p4065_p6 = scmp.lt.s32.totalorder %s4287_s9, %s4287_s9 }
  0x1a   : > { %p4058_p0 = scmp.ne.s32.totalorder %s4287_s9, %s4057_s23  ;;  %p4066_p1 = scmp.lt.s32.totalorder %s4057_s23, %s4057_s23 }
  0x1c   : > { %p4060_p2 = pnand %p4058_p0, %p4309_p9  ;;  %p4067_p8 = por %p4066_p1, %p4065_p6 }
  0x1e   : > { %p4061_p3 = pneg %p4060_p2 }
  0x20   : > { %p4068_p10 = pnand %p4067_p8, %p4061_p3 }
  0x22   : > { %4071 = shalt.err (!%p4068_p10)
}
  0x23   : > { %s4205_s24 = smov 64   ;;  %s4206_s8 = smov 4  }
  0x24   : > { %3871 = dma.hbm_to_vmem [thread:$0]  (!%p4293_p7), %s5900_s1, 256, %s4287_s9, [#allocation5], %s4205_s24, %s4205_s24, %s4206_s8  }
  0x25   : > { %s4072_s17 = scalar_lea.hbm %s5902_s3, 9216 }
  0x26   : > { %p4073_p1 = scmp.ne.s32.totalorder %s5902_s3, %s4072_s17  ;;  %p4079_p13 = scmp.lt.u32.totalorder %s4072_s17, %s5902_s3 }
  0x28   : > { %p4075_p11 = pnand %p4073_p1, %p4309_p9 }
  0x2a   : > { %p4076_p12 = pneg %p4075_p11 }
  0x2c   : > { %p4081_p0 = pnand %p4079_p13, %p4076_p12 }
  0x2e   : > { %4084 = shalt.err (!%p4081_p0)
}
  0x2f   : > { %s4085_s9 = scalar_lea.vmem %s4297_s12, 9216  ;;  %p4093_p8 = scmp.lt.s32.totalorder %s4297_s12, %s4297_s12 }
  0x30   : > { %p4086_p2 = scmp.ne.s32.totalorder %s4297_s12, %s4085_s9  ;;  %p4094_p10 = scmp.lt.s32.totalorder %s4085_s9, %s4085_s9 }
  0x32   : > { %p4088_p3 = pnand %p4086_p2, %p4309_p9  ;;  %p4095_p1 = por %p4094_p10, %p4093_p8 }
  0x34   : > { %p4089_p6 = pneg %p4088_p3 }
  0x36   : > { %p4096_p11 = pnand %p4095_p1, %p4089_p6 }
  0x38   : > { %4099 = shalt.err (!%p4096_p11)
}
  0x39   : > { %3874 = dma.hbm_to_vmem [thread:$0]  (!%p4293_p7), %s5902_s3, 9216, %s4297_s12, [#allocation5], %s4205_s24, %s4205_s24, %s4206_s8  }
  0x3a   : > { %s4100_s16 = scalar_lea.hbm %s5904_s5, 1024 }
  0x3b   : > { %p4101_p12 = scmp.ne.s32.totalorder %s5904_s5, %s4100_s16  ;;  %p4107_p2 = scmp.lt.u32.totalorder %s4100_s16, %s5904_s5 }
  0x3d   : > { %p4103_p13 = pnand %p4101_p12, %p4309_p9 }
  0x3f   : > { %p4104_p0 = pneg %p4103_p13 }
  0x41   : > { %p4109_p3 = pnand %p4107_p2, %p4104_p0 }
  0x43   : > { %4112 = shalt.err (!%p4109_p3)
}
  0x44   : > { %s4113_s22 = scalar_lea.vmem %s250_s14, 1024  ;;  %p4121_p1 = scmp.lt.s32.totalorder %s250_s14, %s250_s14 }
  0x45   : > { %p4114_p6 = scmp.ne.s32.totalorder %s250_s14, %s4113_s22  ;;  %p4122_p11 = scmp.lt.s32.totalorder %s4113_s22, %s4113_s22 }
  0x47   : > { %p4116_p8 = pnand %p4114_p6, %p4309_p9  ;;  %p4123_p4 = por %p4122_p11, %p4121_p1 }
  0x49   : > { %p4117_p10 = pneg %p4116_p8 }
  0x4b   : > { %p4124_p5 = pnand %p4123_p4, %p4117_p10 }
  0x4d   : > { %4127 = shalt.err (!%p4124_p5)
}
  0x4e   : > { %3877 = dma.hbm_to_vmem [thread:$0]  (!%p4293_p7), %s5904_s5, 1024, %s250_s14, [#allocation8], %s4205_s24, %s4205_s24, %s4206_s8  }
  0x4f   : > { %s4382_s20 = sadd.s32 1, %s4200_s27   ;;  %s29_s23 = sadd.s32 1, %s4196_s26 }
  0x50   : > { %s26_s10 = ssub.s32 %s4200_s27, %s4382_s20  ;;  %p36_p5 = scmp.ne.s32.totalorder %s4196_s26, %s4192_s25 }
  0x51   : > { %p27_p4 = scmp.eq.s32.totalorder %s26_s10, 0  ;;  %p37_p9 = scmp.eq.s32.totalorder %s4200_s27, 0 }
  0x52   : > { %p3885_p12 = scmp.lt.s32.totalorder %s4200_s27, 2  ;;  %s266_s13 = sand.u32 1, %s4196_s26  }
  0x53   : > { %s4392_s11 = scalar_select %p27_p4, %s4196_s26, %s29_s23  }
  0x54   : > { %p38_p13 = por %p37_p9, %p36_p5  ;;  %s2813_s15 = sshll.u32 %s266_s13, 8 }
  0x55   : > { %s3202_s16 = sshll.u32 %s4200_s27, 12  ;;  %s270_s14 = scalar_lea.vmem [#allocation2], %s2813_s15 }
  0x56   : > { %s4399_s19 = scalar_lea.hbm %s5899_s0, %s3202_s16  ;;  %s277_s24 = sshll.u32 %s270_s14, 4  ;;  %s4401_s24 = int_to_ptr.vmem [resolvable:$true] %s277_s24 }
  0x57   : > { %p4403_p7 = pnand %p3885_p12, %p38_p13  ;;  %s4407_s27 = scalar_lea.sflag [#allocation3], %s266_s13 }
  0x58   : > { %s4128_s21 = scalar_lea.hbm %s4399_s19, 4096  ;;  %s4133_s9 = scalar_lea.hbm %s5899_s0, 8192 }
  0x59   : > { %p4129_p0 = scmp.ne.s32.totalorder %s4399_s19, %s4128_s21  ;;  %p4130_p2 = pneg %p4403_p7 }
  0x5a   : > { %p4134_p8 = scmp.lt.u32.totalorder %s4399_s19, %s5899_s0  ;;  %p4135_p10 = scmp.lt.u32.totalorder %s4133_s9, %s4128_s21 }
  0x5b   : > { %p4131_p3 = pnand %p4130_p2, %p4129_p0  ;;  %p4137_p11 = scmp.lt.u32.totalorder %s4128_s21, %s4399_s19 }
  0x5c   : > { %p4136_p1 = por %p4135_p10, %p4134_p8 }
  0x5d   : > { %p4132_p6 = pneg %p4131_p3 }
  0x5e   : > { %p4138_p4 = por %p4137_p11, %p4136_p1 }
  0x60   : > { %p4139_p5 = pnand %p4138_p4, %p4132_p6 }
  0x62   : > { %4142 = shalt.err (!%p4139_p5)
}
  0x63   : > { %s4143_s13 = scalar_lea.vmem %s4401_s24, 4096  ;;  %s4207_s15 = smov [#allocation2]  }
  0x64   : > { %p4144_p9 = scmp.ne.s32.totalorder %s4401_s24, %s4143_s13  ;;  %s4148_s16 = sshll.u32 %s4207_s15, 4  ;;  %s4149_s16 = int_to_ptr.vmem [resolvable:$false] %s4148_s16 }
  0x65   : > { %s4150_s17 = scalar_lea.vmem %s4149_s16, 8192  ;;  %p4151_p0 = scmp.lt.s32.totalorder %s4401_s24, %s4149_s16 }
  0x66   : > { %p4146_p12 = pnand %p4144_p9, %p4130_p2  ;;  %p4152_p3 = scmp.lt.s32.totalorder %s4150_s17, %s4143_s13 }
  0x68   : > { %p4147_p13 = pneg %p4146_p12  ;;  %p4153_p8 = por %p4152_p3, %p4151_p0 }
  0x6a   : > { %p4154_p10 = pnand %p4153_p8, %p4147_p13 }
  0x6c   : > { %4157 = shalt.err (!%p4154_p10)
}
  0x6d   : > { %s4208_s18 = smov 128   ;;  %s4209_s14 = smov 8  }
  0x6e   : > { %3881 = dma.hbm_to_vmem [thread:$0]  (!%p4403_p7), %s4399_s19, 4096, %s4401_s24, %s4407_s27, %s4208_s18, %s4208_s18, %s4209_s14  }
  0x6f   : > { %p5927_p2 = scmp.ne.s32.totalorder %s5923_s30, 0 }
  0x71   : > { %289 = sbr.rel (%p5927_p2) target bundleno = 1135 (0x46f), region = 48 }
  0x78   : > { %s291_s21 = sand.u32 1, %s4192_s25   ;;  %p5928_p6 = scmp.ne.s32.totalorder %s5922_s29, 0 }
  0x79   : > { %s2817_s22 = sshll.u32 %s291_s21, 8  ;;  %s292_s12 = scalar_lea.sflag [#allocation3], %s291_s21 }
  0x7a   : > { %s4438_s9 = scalar_lea.vmem [#allocation2], %s2817_s22 }
  0x7b   : > { %4175 = dma.done.wait (%p5928_p6), %s292_s12, 4096  }
  0x7c   : > { %4177 = vsyncadd (%p5928_p6), %s292_s12, 4294963200  ;;  %p5929_p1 = scmp.eq.s32.totalorder %s4271_s28, 0 }
  0x7e   : > { %4179 = dma.done.wait (%p5929_p1), [#allocation5], 9472   ;;  %p5930_p7 = pmov %p5929_p1 }
  0x7f   : > { %p5931_p11 = pmov %p5929_p1 }
  0x80   : > { %4181 = vsyncadd (%p5930_p7), [#allocation5], 4294957824 }
  0x81   : > { %4183 = dma.done.wait (%p5931_p11), [#allocation8], 1024   ;;  %p5932_p4 = pmov %p5929_p1 }
  0x82   : > { %v3930_v0 = vld [vmem:[#allocation4] sm:$0xff]   ;;  %v3931_v1 = vld [vmem:[#allocation4 + $0x8] sm:$0xff]   ;;  %vm415_vm0 = vcmask 261120   ;;  %v346_v7 = vld [vmem:[%s4438_s9 + $0x10] sm:$0xff]  ;;  %vm4211_vm5 = vmmov 1   ;;  %p338_p5 = scmp.lt.s32.totalorder %s4271_s28, 1 }
  0x83   : > { %4185 = vsyncadd (%p5932_p4), [#allocation8], 4294966272  ;;  %3718 = vmatprep.subr.bf16.mxu0 %v3930_v0  ;;  %3850 = vmatprep.subr.bf16.mxu1 %v3930_v0  ;;  %v344_v2 = vld [vmem:[%s4438_s9] sm:$0xff]  ;;  %v345_v3 = vld [vmem:[%s4438_s9 + $0x8] sm:$0xff] }
  0x84   : > { %v360_v4 = vld [vmem:[%s4438_s9 + $0x80] sm:$0xff]  ;;  %3719 = vmatpush3.bf16.msra.mxu0 %v3930_v0  ;;  %3852 = vmatpush3.bf16.msra.mxu1 %v3930_v0  ;;  %v376_v5 = vpack.c.bf16 %v345_v3, %v344_v2  ;;  %v361_v6 = vld [vmem:[%s4438_s9 + $0x88] sm:$0xff]  ;;  %v347_v8 = vld [vmem:[%s4438_s9 + $0x18] sm:$0xff]  ;;  %s6042_s28 = smov (!%p338_p5, %s4271_s28), 1 }
  0x85   : > { %3720 = vmatprep.subr.bf16.mxu0 %v3931_v1  ;;  %3851 = vmatprep.subr.bf16.mxu1 %v3931_v1  ;;  %v384_v9 = vpack.c.bf16 %v361_v6, %v360_v4  ;;  %v362_v10 = vld [vmem:[%s4438_s9 + $0x90] sm:$0xff]  ;;  %v363_v11 = vld [vmem:[%s4438_s9 + $0x98] sm:$0xff]  ;;  %v348_v12 = vld [vmem:[%s4438_s9 + $0x20] sm:$0xff]  ;;  %v377_v16 = vpack.c.bf16 %v347_v8, %v346_v7  ;;  %s3203_s10 = sshll.u32 %s6042_s28, 8 }
  0x86   : > { %3722 = vmatprep.mubr.msk.bf16.mxu0 %vm415_vm0, %v376_v5  ;;  %v349_v13 = vld [vmem:[%s4438_s9 + $0x28] sm:$0xff]  ;;  %v364_v14 = vld [vmem:[%s4438_s9 + $0xa0] sm:$0xff]  ;;  %v385_v17 = vpack.c.bf16 %v363_v11, %v362_v10  ;;  %v350_v20 = vld [vmem:[%s4438_s9 + $0x30] sm:$0xff]  ;;  %s5767_s13 = scalar_lea.vmem %s5906_s7, %s3203_s10 }
  0x87   : > { %v365_v15 = vld [vmem:[%s4438_s9 + $0xa8] sm:$0xff]  ;;  %3738 = vmatprep.mubr.msk.bf16.mxu1 %vm415_vm0, %v384_v9  ;;  %v378_v18 = vpack.c.bf16 %v349_v13, %v348_v12  ;;  %v351_v21 = vld [vmem:[%s4438_s9 + $0x38] sm:$0xff]  ;;  %v366_v22 = vld [vmem:[%s4438_s9 + $0xb0] sm:$0xff]  ;;  %v5910_v13 = vmov 0.0|0.0  }
  0x88   : > { %3721 = vmatpush3.bf16.msra.mxu0 %v3931_v1  ;;  %3853 = vmatpush3.bf16.msra.mxu1 %v3931_v1  ;;  %v386_v19 = vpack.c.bf16 %v365_v15, %v364_v14  ;;  %v367_v23 = vld [vmem:[%s4438_s9 + $0xb8] sm:$0xff]  ;;  %v352_v24 = vld [vmem:[%s4438_s9 + $0x40] sm:$0xff]  ;;  %v353_v25 = vld [vmem:[%s4438_s9 + $0x48] sm:$0xff]  ;;  %v379_v29 = vpack.c.bf16 %v351_v21, %v350_v20 }
  0x89   : > { %v368_v26 = vld [vmem:[%s4438_s9 + $0xc0] sm:$0xff]  ;;  %v369_v27 = vld [vmem:[%s4438_s9 + $0xc8] sm:$0xff]  ;;  %v3932_v28 = vld [vmem:[#allocation6 + $0x40] sm:$0xff]   ;;  %v387_v30 = vpack.c.bf16 %v367_v23, %v366_v22  ;;  %v380_v32 = vpack.c.bf16 %v353_v25, %v352_v24 }
  0x8a   : > { %v3933_v31 = vld [vmem:[#allocation6] sm:$0xff]   ;;  %v388_v33 = vpack.c.bf16 %v369_v27, %v368_v26  ;;  %3222 = vmatprep.subr.bf16.mxu1 %v3932_v28  ;;  %v3934_v34 = vld [vmem:[#allocation6 + $0x48] sm:$0xff]   ;;  %v356_v40 = vld [vmem:[%s4438_s9 + $0x60] sm:$0xff] }
  0x8b   : > { %3723 = vmatmul.mubr.msk.bf16.vlgmr.msra.gmra.mrb[0].mxu0 %vm415_vm0, %v377_v16  ;;  %3739 = vmatmul.mubr.msk.bf16.vlgmr.msra.gmra.mrb[0].mxu1 %vm415_vm0, %v385_v17  ;;  %v3935_v35 = vld [vmem:[#allocation6 + $0x8] sm:$0xff]   ;;  %v354_v36 = vld [vmem:[%s4438_s9 + $0x50] sm:$0xff]  ;;  %v357_v41 = vld [vmem:[%s4438_s9 + $0x68] sm:$0xff] }
  0x8c   : > { %3726 = vmatprep.mubr.msk.bf16.mxu0 %vm415_vm0, %v378_v18  ;;  %3742 = vmatprep.mubr.msk.bf16.mxu1 %vm415_vm0, %v386_v19  ;;  %v355_v37 = vld [vmem:[%s4438_s9 + $0x58] sm:$0xff]  ;;  %v370_v38 = vld [vmem:[%s4438_s9 + $0xd0] sm:$0xff]  ;;  %v372_v42 = vld [vmem:[%s4438_s9 + $0xe0] sm:$0xff]  ;;  %v382_v46 = vpack.c.bf16 %v357_v41, %v356_v40 }
  0x8d   : > { %3223 = vmatpush3.bf16.msra.mxu1 %v3933_v31  ;;  %v371_v39 = vld [vmem:[%s4438_s9 + $0xd8] sm:$0xff]  ;;  %v373_v43 = vld [vmem:[%s4438_s9 + $0xe8] sm:$0xff]  ;;  %v381_v44 = vpack.c.bf16 %v355_v37, %v354_v36  ;;  %v358_v48 = vld [vmem:[%s4438_s9 + $0x70] sm:$0xff] }
  0x8e   : > { %3224 = vmatprep.subr.bf16.mxu1 %v3934_v34  ;;  %v389_v45 = vpack.c.bf16 %v371_v39, %v370_v38  ;;  %v390_v47 = vpack.c.bf16 %v373_v43, %v372_v42  ;;  %v359_v49 = vld [vmem:[%s4438_s9 + $0x78] sm:$0xff]  ;;  %v374_v50 = vld [vmem:[%s4438_s9 + $0xf0] sm:$0xff]  ;;  %v3936_v54 = vld [vmem:[#allocation6 + $0x50] sm:$0xff]   ;;  %v657_v34 = vlaneseq }
  0x8f   : > { %v375_v51 = vld [vmem:[%s4438_s9 + $0xf8] sm:$0xff]  ;;  %v383_v52 = vpack.c.bf16 %v359_v49, %v358_v48  ;;  %v3937_v55 = vld [vmem:[#allocation6 + $0x10] sm:$0xff]   ;;  %v3938_v56 = vld [vmem:[#allocation6 + $0x58] sm:$0xff]  }
  0x90   : > { %v391_v53 = vpack.c.bf16 %v375_v51, %v374_v50  ;;  %v3939_v57 = vld [vmem:[#allocation6 + $0xc0] sm:$0xff]   ;;  %v3940_v58 = vld [vmem:[#allocation6 + $0x18] sm:$0xff]   ;;  %v3943_v61 = vld [vmem:[#allocation6 + $0xc8] sm:$0xff]  }
  0x91   : > { %3225 = vmatpush3.bf16.msra.mxu1 %v3935_v35  ;;  %v3941_v59 = vld [vmem:[#allocation6 + $0x80] sm:$0xff]   ;;  %3334 = vmatprep.subr.bf16.mxu0 %v3939_v57  ;;  %v3945_v63 = vld [vmem:[#allocation6 + $0x88] sm:$0xff]   ;;  %v3947_v1 = vld [vmem:[#allocation6 + $0xd0] sm:$0xff]  }
  0x92   : > { %3226 = vmatprep.subr.bf16.mxu1 %v3936_v54  ;;  %3335 = vmatpush3.bf16.msra.mxu0 %v3941_v59  ;;  %v3942_v60 = vld [vmem:[#allocation6 + $0x60] sm:$0xff]   ;;  %v3946_v0 = vld [vmem:[#allocation6 + $0x68] sm:$0xff]   ;;  %v3949_v3 = vld [vmem:[#allocation6 + $0x90] sm:$0xff]  }
  0x93   : > { %3727 = vmatmul.mubr.msk.bf16.gmra.mrb[4].mxu0 %vm415_vm0, %v379_v29  ;;  %3743 = vmatmul.mubr.msk.bf16.gmra.mrb[4].mxu1 %vm415_vm0, %v387_v30  ;;  %v3944_v62 = vld [vmem:[#allocation6 + $0x20] sm:$0xff]   ;;  %v3948_v2 = vld [vmem:[#allocation6 + $0x28] sm:$0xff]   ;;  %v3950_v4 = vld [vmem:[#allocation6 + $0x70] sm:$0xff]  }
  0x94   : > { %3730 = vmatprep.mubr.msk.bf16.mxu0 %vm415_vm0, %v380_v32  ;;  %3746 = vmatprep.mubr.msk.bf16.mxu1 %vm415_vm0, %v388_v33  ;;  %v3951_v5 = vld [vmem:[#allocation6 + $0xd8] sm:$0xff]   ;;  %v3952_v6 = vld [vmem:[#allocation6 + $0x30] sm:$0xff]   ;;  %v3955_v9 = vld [vmem:[#allocation6 + $0xe0] sm:$0xff]  }
  0x95   : > { %3227 = vmatpush3.bf16.msra.mxu1 %v3937_v55  ;;  %3336 = vmatprep.subr.bf16.mxu0 %v3943_v61  ;;  %v3953_v7 = vld [vmem:[#allocation6 + $0x98] sm:$0xff]   ;;  %v3957_v11 = vld [vmem:[#allocation6 + $0xa0] sm:$0xff]   ;;  %v3958_v12 = vld [vmem:[#allocation6 + $0xe8] sm:$0xff]  }
  0x96   : > { %3228 = vmatprep.subr.bf16.mxu1 %v3938_v56  ;;  %3337 = vmatpush3.bf16.msra.mxu0 %v3945_v63  ;;  %v3954_v8 = vld [vmem:[#allocation6 + $0x78] sm:$0xff]   ;;  %v3959_v14 = vld [vmem:[#allocation6 + $0xa8] sm:$0xff]   ;;  %v3962_v15 = vld [vmem:[#allocation6 + $0xf0] sm:$0xff]  }
  0x97   : > { %3338 = vmatprep.subr.bf16.mxu0 %v3947_v1  ;;  %v3956_v10 = vld [vmem:[#allocation6 + $0x38] sm:$0xff]   ;;  %v3963_v16 = vld [vmem:[#allocation6 + $0xb0] sm:$0xff]   ;;  %v3960_v18 = vld [vmem:[#allocation6 + $0x140] sm:$0xff]  }
  0x98   : > { %v3964_v17 = vld [vmem:[#allocation6 + $0xf8] sm:$0xff]   ;;  %v3961_v19 = vld [vmem:[#allocation6 + $0x100] sm:$0xff]   ;;  %v3966_v21 = vld [vmem:[#allocation6 + $0x148] sm:$0xff]  }
  0x99   : > { %3229 = vmatpush3.bf16.msra.mxu1 %v3940_v58  ;;  %v3965_v20 = vld [vmem:[#allocation6 + $0xb8] sm:$0xff]   ;;  %v3967_v22 = vld [vmem:[#allocation6 + $0x108] sm:$0xff]   ;;  %v3968_v23 = vld [vmem:[#allocation6 + $0x150] sm:$0xff]  }
  0x9a   : > { %3230 = vmatprep.subr.bf16.mxu1 %v3942_v60  ;;  %3339 = vmatpush3.bf16.msra.mxu0 %v3949_v3  ;;  %v3969_v24 = vld [vmem:[#allocation6 + $0x110] sm:$0xff]   ;;  %v3970_v25 = vld [vmem:[#allocation6 + $0x158] sm:$0xff]   ;;  %v3972_v27 = vld [vmem:[#allocation6 + $0x1c0] sm:$0xff]  }
  0x9b   : > { %3731 = vmatmul.mubr.msk.bf16.gmra.mrb[8].mxu0 %vm415_vm0, %v381_v44  ;;  %3747 = vmatmul.mubr.msk.bf16.gmra.mrb[8].mxu1 %vm415_vm0, %v389_v45  ;;  %v3971_v26 = vld [vmem:[#allocation6 + $0x118] sm:$0xff]   ;;  %v3974_v28 = vld [vmem:[#allocation6 + $0x160] sm:$0xff]   ;;  %v3978_v30 = vld [vmem:[#allocation6 + $0x168] sm:$0xff]  }
  0x9c   : > { %3734 = vmatprep.mubr.msk.bf16.mxu0 %vm415_vm0, %v382_v46  ;;  %3750 = vmatprep.mubr.msk.bf16.mxu1 %vm415_vm0, %v390_v47  ;;  %v3975_v29 = vld [vmem:[#allocation6 + $0x120] sm:$0xff]   ;;  %v3979_v31 = vld [vmem:[#allocation6 + $0x128] sm:$0xff]   ;;  %v3982_v32 = vld [vmem:[#allocation6 + $0x170] sm:$0xff]   ;;  %v4511_v46 = vshrl.u32 %v657_v34, 7 }
  0x9d   : > { %3231 = vmatpush3.bf16.msra.mxu1 %v3944_v62  ;;  %3340 = vmatprep.subr.bf16.mxu0 %v3951_v5  ;;  %v4505_v33 = vld [vmem:[%s5901_s2] ss:$0 sm:$0xff] }
  0x9e   : > { %3232 = vmatprep.subr.bf16.mxu1 %v3946_v0  ;;  %3341 = vmatpush3.bf16.msra.mxu0 %v3953_v7  ;;  %v3983_v37 = vld [vmem:[#allocation6 + $0x130] sm:$0xff]   ;;  %v4528_v58 = vadd.s32 8, %v4511_v46  ;;  %vm695_vm1 = vcmp.lt.s32.totalorder %v4511_v46, 1  ;;  %vm822_vm2 = vcmp.lt.s32.totalorder %v4511_v46, 7  ;;  %vm660_vm3 = vcmp.ge.s32.totalorder %v4511_v46, 1  ;;  %v3995_v46 = vld [vmem:[#allocation6 + $0x1f8] sm:$0xff]  }
  0x9f   : > { %3342 = vmatprep.subr.bf16.mxu0 %v3955_v9  ;;  %vm4753_vm6 = vmpackc.low %vm4211_vm5, %vm660_vm3 }
  0xa0   : > { %vm663_vm4 = vcmp.le.s32.totalorder %v4528_v58, 14 }
  0xa1   : > { %3233 = vmatpush3.bf16.msra.mxu1 %v3948_v2  ;;  %vm4906_vm7 = vmpackc.low %vm663_vm4, %vm4211_vm5 }
  0xa2   : > { %3234 = vmatprep.subr.bf16.mxu1 %v3950_v4  ;;  %3343 = vmatpush3.bf16.msra.mxu0 %v3957_v11 }
  0xa3   : > { %3735 = vmatmul.mubr.msk.bf16.gmra.mrb[12].mxu0 %vm415_vm0, %v383_v52  ;;  %3751 = vmatmul.mubr.msk.bf16.gmra.mrb[12].mxu1 %vm415_vm0, %v391_v53 }
  0xa4   : > { %1530 = vmatprep.mubr.bf16.mxu1 %v5910_v13  ;;  %3344 = vmatprep.subr.bf16.mxu0 %v3958_v12 }
  0xa5   : > { %3235 = vmatpush3.bf16.msra.mxu1 %v3952_v6 }
  0xa6   : > { %3236 = vmatprep.subr.bf16.mxu1 %v3954_v8  ;;  %3345 = vmatpush3.bf16.msra.mxu0 %v3959_v14 }
  0xa7   : > { %3346 = vmatprep.subr.bf16.mxu0 %v3962_v15 }
  0xa9   : > { %3237 = vmatpush3.bf16.msra.mxu1 %v3956_v10 }
  0xaa   : > { %3347 = vmatpush3.bf16.msra.mxu0 %v3963_v16  ;;  %3446 = vmatprep.subr.bf16.mxu1 %v3960_v18 }
  0xab   : > { %3348 = vmatprep.subr.bf16.mxu0 %v3964_v17 }
  0xac   : > { %1531 = vmatmul.mubr.bf16.vlgmr.msra.gmra.mrb[16].mxu1 %v5910_v13  ;;  %v4665_v13 = vld [vmem:[#allocation6 + $0x200] sm:$0xff]  }
  0xad   : > { %3447 = vmatpush3.bf16.msra.mxu1 %v3961_v19 }
  0xae   : > { %3349 = vmatpush3.bf16.msra.mxu0 %v3965_v20  ;;  %3448 = vmatprep.subr.bf16.mxu1 %v3966_v21 }
  0xaf   : > { %3558 = vmatprep.subr.bf16.mxu0 %v3972_v27 }
  0xb1   : > { %3449 = vmatpush3.bf16.msra.mxu1 %v3967_v22 }
  0xb2   : > { %3450 = vmatprep.subr.bf16.mxu1 %v3968_v23 }
  0xb5   : > { %3451 = vmatpush3.bf16.msra.mxu1 %v3969_v24 }
  0xb6   : > { %3452 = vmatprep.subr.bf16.mxu1 %v3970_v25 }
  0xb9   : > { %3453 = vmatpush3.bf16.msra.mxu1 %v3971_v26 }
  0xba   : > { %3454 = vmatprep.subr.bf16.mxu1 %v3974_v28 }
  0xbd   : > { %3455 = vmatpush3.bf16.msra.mxu1 %v3975_v29 }
  0xbe   : > { %3456 = vmatprep.subr.bf16.mxu1 %v3978_v30 }
  0xc1   : > { %3457 = vmatpush3.bf16.msra.mxu1 %v3979_v31 }
  0xc2   : > { %3458 = vmatprep.subr.bf16.mxu1 %v3982_v32  ;;  %v3986_v32 = vld [vmem:[#allocation6 + $0x178] sm:$0xff]  }
  0xc5   : > { %3459 = vmatpush3.bf16.msra.mxu1 %v3983_v37 }
  0xc6   : > { %3460 = vmatprep.subr.bf16.mxu1 %v3986_v32 }
 0x15e   : > { %v3740_v35 = vpop.f32.mrb[0].mxu1  ;;  %v3724_v36 = vpop.f32.mrb[0].mxu0 }
 0x15f   : > { %v571_v38 = vadd.f32 %v3740_v35, %v4505_v33  ;;  %v562_v39 = vpop.f32.mrb[1].mxu1  ;;  %v507_v40 = vadd.f32 %v3724_v36, %v4505_v33  ;;  %v498_v41 = vpop.f32.mrb[1].mxu0 }
 0x160   : > { %v563_v42 = vadd.f32 %v4505_v33, %v562_v39  ;;  %v3741_v43 = vpop.f32.mrb[2].mxu1  ;;  %v499_v44 = vadd.f32 %v4505_v33, %v498_v41  ;;  %v3725_v45 = vpop.f32.mrb[2].mxu0 }
 0x161   : > { %v4513_v47 = vmax.f32 %v571_v38, 0.0  ;;  %v574_v48 = vadd.f32 %v3741_v43, %v4505_v33  ;;  %v565_v49 = vpop.f32.mrb[3].mxu1  ;;  %v4516_v50 = vmax.f32 %v507_v40, 0.0  ;;  %v510_v51 = vadd.f32 %v3725_v45, %v4505_v33  ;;  %v501_v52 = vpop.f32.mrb[3].mxu0 }
 0x162   : > { %v4519_v53 = vmax.f32 %v563_v42, 0.0  ;;  %v566_v54 = vadd.f32 %v4505_v33, %v565_v49  ;;  %v4522_v55 = vmax.f32 %v499_v44, 0.0  ;;  %v502_v56 = vadd.f32 %v4505_v33, %v501_v52 }
 0x163   : > { %v4525_v57 = vmax.f32 %v574_v48, 0.0  ;;  %v666_v62 = vrot.slane %v4516_v50, 7  ;;  %v793_v2 = vrot.slane %v4516_v50, 1  ;;  %v4541_v6 = vmax.f32 %v510_v51, 0.0 }
 0x164   : > { %v4532_v61 = vmax.f32 %v566_v54, 0.0  ;;  %v664_v5 = vrot.slane %v4522_v55, 7  ;;  %v4543_v7 = vmax.f32 %v502_v56, 0.0  ;;  %v5912_v20 = vrot.slane %v4522_v55, 1 }
 0x165   : > { %v4553_v15 = vpack.c.bf16 %v4525_v57, %v4513_v47  ;;  %v667_v25 = vrot.slane %v4541_v6, 7  ;;  %v794_v35 = vrot.slane %v4541_v6, 1 }
 0x166   : > { %v3744_v4 = vpop.f32.mrb[4].mxu1  ;;  %v3728_v8 = vpop.f32.mrb[4].mxu0  ;;  %v4549_v14 = vpack.c.bf16 %v4532_v61, %v4519_v53  ;;  %v665_v36 = vrot.slane %v4543_v7, 7  ;;  %v792_v37 = vrot.slane %v4543_v7, 1  ;;  %v4591_v56 = vpack.c.bf16 %v4543_v7, %v4522_v55 }
 0x167   : > { %v587_v9 = vadd.f32 %v3744_v4, %v4505_v33  ;;  %v578_v10 = vpop.f32.mrb[5].mxu1  ;;  %v523_v11 = vadd.f32 %v3728_v8, %v4505_v33  ;;  %v514_v12 = vpop.f32.mrb[5].mxu0  ;;  %v3987_v4 = vld [vmem:[#allocation6 + $0x138] sm:$0xff]  }
 0x168   : > { %v579_v18 = vadd.f32 %v4505_v33, %v578_v10  ;;  %v3745_v19 = vpop.f32.mrb[6].mxu1  ;;  %v3729_v21 = vpop.f32.mrb[6].mxu0  ;;  %v515_v30 = vadd.f32 %v4505_v33, %v514_v12  ;;  %1538 = vmatprep.mubr.bf16.mxu1 %v4591_v56  ;;  %3461 = vmatpush3.bf16.msra.mxu1 %v3987_v4 }
 0x169   : > { %v4559_v22 = vmax.f32 %v587_v9, 0.0  ;;  %v590_v23 = vadd.f32 %v3745_v19, %v4505_v33  ;;  %v581_v24 = vpop.f32.mrb[7].mxu1  ;;  %v4563_v26 = vmax.f32 %v523_v11, 0.0  ;;  %v517_v27 = vpop.f32.mrb[7].mxu0  ;;  %v526_v31 = vadd.f32 %v3729_v21, %v4505_v33  ;;  %3754 = vmatprep.subr.bf16.mxu1 %v4665_v13 }
 0x16a   : > { %v4565_v28 = vmax.f32 %v579_v18, 0.0  ;;  %v582_v29 = vadd.f32 %v4505_v33, %v581_v24  ;;  %v4583_v45 = vmax.f32 %v515_v30, 0.0  ;;  %v518_v52 = vadd.f32 %v4505_v33, %v517_v27 }
 0x16b   : > { %v4570_v34 = vmax.f32 %v590_v23, 0.0  ;;  %v670_v41 = vrot.slane %v4563_v26, 7  ;;  %v4586_v51 = vmax.f32 %v526_v31, 0.0 }
 0x16c   : > { %v4577_v40 = vmax.f32 %v582_v29, 0.0  ;;  %v668_v19 = vrot.slane %v4583_v45, 7  ;;  %v4600_v24 = vmax.f32 %v518_v52, 0.0  ;;  %v795_v31 = vrot.slane %v4583_v45, 1 }
 0x16d   : > { %v671_v52 = vrot.slane %v4586_v51, 7 }
 0x16e   : > { %v3748_v49 = vpop.f32.mrb[8].mxu1  ;;  %v3732_v54 = vpop.f32.mrb[8].mxu0  ;;  %v669_v4 = vrot.slane %v4600_v24, 7 }
 0x16f   : > { %v603_v11 = vadd.f32 %v3748_v49, %v4505_v33  ;;  %v594_v12 = vpop.f32.mrb[9].mxu1  ;;  %v530_v18 = vpop.f32.mrb[9].mxu0  ;;  %v539_v27 = vadd.f32 %v3732_v54, %v4505_v33 }
 0x170   : > { %v595_v21 = vadd.f32 %v4505_v33, %v594_v12  ;;  %v3749_v23 = vpop.f32.mrb[10].mxu1  ;;  %v3733_v29 = vpop.f32.mrb[10].mxu0  ;;  %v531_v8 = vadd.f32 %v4505_v33, %v530_v18 }
 0x171   : > { %v4604_v30 = vmax.f32 %v603_v11, 0.0  ;;  %v606_v32 = vadd.f32 %v3749_v23, %v4505_v33  ;;  %v597_v49 = vpop.f32.mrb[11].mxu1  ;;  %v533_v10 = vpop.f32.mrb[11].mxu0  ;;  %v4617_v11 = vmax.f32 %v539_v27, 0.0  ;;  %v542_v23 = vadd.f32 %v3733_v29, %v4505_v33 }
 0x172   : > { %v4609_v12 = vmax.f32 %v595_v21, 0.0  ;;  %v598_v39 = vadd.f32 %v4505_v33, %v597_v49  ;;  %v4628_v42 = vmax.f32 %v531_v8, 0.0  ;;  %v534_v49 = vadd.f32 %v4505_v33, %v533_v10 }
 0x173   : > { %v4614_v38 = vmax.f32 %v606_v32, 0.0  ;;  %v4635_v17 = vmax.f32 %v542_v23, 0.0  ;;  %v724_v10 = vsel %vm695_vm1, %v664_v5, %v665_v36 }
 0x174   : > { %v4623_v3 = vmax.f32 %v598_v39, 0.0 }
 0x176   : > { %v3736_v39 = vpop.f32.mrb[12].mxu0  ;;  %v3752_v9 = vpop.f32.mrb[12].mxu1 }
 0x177   : > { %v555_v32 = vadd.f32 %v3736_v39, %v4505_v33  ;;  %v619_v8 = vadd.f32 %v3752_v9, %v4505_v33  ;;  %v546_v43 = vpop.f32.mrb[13].mxu0  ;;  %v610_v60 = vpop.f32.mrb[13].mxu1  ;;  %v4651_v9 = vpack.c.bf16 %v4541_v6, %v4516_v50  ;;  %v719_v50 = vsel %vm695_vm1, %v669_v4, %v670_v41 }
 0x178   : > { %v547_v27 = vadd.f32 %v4505_v33, %v546_v43  ;;  %v611_v29 = vadd.f32 %v4505_v33, %v610_v60  ;;  %v3737_v59 = vpop.f32.mrb[14].mxu0  ;;  %v3753_v1 = vpop.f32.mrb[14].mxu1  ;;  %v4655_v60 = vmax.f32 %v534_v49, 0.0 }
 0x179   : > { %5933 = vst [vmem:[#allocation12_spill] sm:$0xff] %v4651_v9  ;;  %v4657_v39 = vmax.f32 %v555_v32, 0.0  ;;  %v613_v0 = vpop.f32.mrb[15].mxu1  ;;  %v549_v63 = vpop.f32.mrb[15].mxu0  ;;  %v4660_v48 = vmax.f32 %v619_v8, 0.0  ;;  %v558_v54 = vadd.f32 %v3737_v59, %v4505_v33  ;;  %v622_v43 = vadd.f32 %v3753_v1, %v4505_v33 }
 0x17a   : > { %v4662_v18 = vmax.f32 %v547_v27, 0.0  ;;  %v673_v49 = vrot.slane %v4655_v60, 7  ;;  %v4670_v32 = vmax.f32 %v611_v29, 0.0  ;;  %v800_v21 = vrot.slane %v4655_v60, 1 }
 0x17b   : > { %v4679_v44 = vmax.f32 %v558_v54, 0.0  ;;  %v614_v29 = vadd.f32 %v4505_v33, %v613_v0  ;;  %v722_v8 = vsel %vm695_vm1, %v666_v62, %v667_v25  ;;  %v723_v27 = vsel %vm695_vm1, %v665_v36, %v666_v62 }
 0x17c   : > { %v851_v0 = vsel %vm822_vm2, %v792_v37, %v793_v2  ;;  %v803_v1 = vrot.slane %v4662_v18, 1  ;;  %v4703_v59 = vmax.f32 %v622_v43, 0.0  ;;  %v4705_v16 = vpack.c.bf16 %v722_v8, %v723_v27 }
 0x17d   : > { %v852_v62 = vsel %vm822_vm2, %v5912_v20, %v792_v37  ;;  %v4716_v36 = vpack.c.bf16 %v4600_v24, %v4583_v45  ;;  %v720_v43 = vsel %vm695_vm1, %v668_v19, %v669_v4  ;;  %v721_v37 = vsel %vm695_vm1, %v667_v25, %v668_v19 }
 0x17e   : > { %5934 = vst [vmem:[#allocation13_spill] sm:$0xff] %v4705_v16  ;;  %v5913_v7 = vrot.slane %v4703_v59, 7  ;;  %v4727_v27 = vpack.c.bf16 %v851_v0, %v852_v62  ;;  %v4736_v23 = vmax.f32 %v614_v29, 0.0  ;;  %v4738_v54 = vpack.c.bf16 %v720_v43, %v721_v37 }
 0x17f   : > { %5935 = vst [vmem:[#allocation14_spill] sm:$0xff] %v4716_v36  ;;  %v4742_v8 = vpack.c.bf16 %v4586_v51, %v4563_v26  ;;  %v849_v19 = vsel %vm822_vm2, %v794_v35, %v795_v31  ;;  %v718_v29 = vsel %vm695_vm1, %v670_v41, %v671_v52  ;;  %v550_v6 = vadd.f32 %v4505_v33, %v549_v63  ;;  %v3976_v63 = vld [vmem:[#allocation6 + $0x1c8] sm:$0xff]  }
 0x180   : > { %5936 = vst [vmem:[#allocation15_spill] sm:$0xff] %v4738_v54  ;;  %v725_v0 = vsel %vm695_vm1, %v5913_v7, %v664_v5  ;;  %v850_v5 = vsel %vm822_vm2, %v793_v2, %v794_v35  ;;  %v3973_v2 = vld [vmem:[#allocation6 + $0x180] sm:$0xff]   ;;  %v4784_v35 = vpack.c.bf16 %v718_v29, %v719_v50  ;;  %v5940_v37 = vrot.slane %v4563_v26, 1 }
 0x181   : > { %5937 = vst [vmem:[#allocation16_spill] sm:$0xff] %v4742_v8  ;;  %v2916_v62 = vpack.c.bf16 %v724_v10, %v725_v0  ;;  %v4775_v43 = vpack.c.bf16 %v849_v19, %v850_v5  ;;  %v5941_v7 = vrot.slane %v4600_v24, 1  ;;  %v4800_v33 = vpack.c.bf16 %v4655_v60, %v4628_v42 }
 0x182   : > { %v638_v41 = vmax.f32 %v550_v6, 0.0  ;;  %v5943_v45 = vrot.slane %v4628_v42, 7  ;;  %v5945_v29 = vmov 0.0|0.0   ;;  %v4827_v50 = vpack.c.bf16 %v4635_v17, %v4617_v11 }
 0x183   : > { %v847_v10 = vsel %vm822_vm2, %v5941_v7, %v5940_v37  ;;  %v5942_v0 = vmov %v5941_v7  ;;  %2917 = vmatmul.mubr.msk.bf16.gmra.mrb[20].mxu1 %vm4753_vm6, %v2916_v62  ;;  %2962 = vmatprep.mubr.msk.bf16.mxu0 %vm4753_vm6, %v2916_v62  ;;  %v5946_v6 = vrot.slane %v4628_v42, 1  ;;  %v5947_v37 = vrot.slane %v4586_v51, 1 }
 0x184   : > { %v848_v19 = vsel %vm822_vm2, %v795_v31, %v5942_v0  ;;  %v716_v24 = vsel %vm695_vm1, %v5943_v45, %v673_v49  ;;  %v5944_v31 = vmov %v5943_v45  ;;  %1546 = vmatprep.mubr.bf16.mxu1 %v4651_v9  ;;  %1692 = vmatmul.mubr.bf16.vlgmr.msra.gmra.mrb[16].mxu0 %v5945_v29  ;;  %v804_v0 = vrot.slane %v638_v41, 1 }
 0x185   : > { %v4806_v4 = vpack.c.bf16 %v847_v10, %v848_v19  ;;  %v717_v7 = vsel %vm695_vm1, %v671_v52, %v5944_v31  ;;  %v845_v10 = vsel %vm822_vm2, %v5947_v37, %v5946_v6  ;;  %2965 = vmatprep.mubr.msk.bf16.mxu0 %vm4753_vm6, %v4705_v16  ;;  %v677_v52 = vrot.slane %v638_v41, 7  ;;  %3559 = vmatpush3.bf16.msra.mxu0 %v3973_v2 }
 0x186   : > { %v4823_v62 = vpack.c.bf16 %v716_v24, %v717_v7  ;;  %v5948_v19 = vmov %v5947_v37  ;;  %v5949_v45 = vrot.slane %v4563_v26, 1  ;;  %v5950_v31 = vrot.slane %v4635_v17, 7  ;;  %v3977_v37 = vld [vmem:[#allocation6 + $0x188] sm:$0xff]   ;;  %3560 = vmatprep.subr.bf16.mxu0 %v3976_v63 }
 0x187   : > { %v5951_v7 = vrot.slane %v4617_v11, 7  ;;  %v5953_v51 = vrot.slane %v4617_v11, 1  ;;  %v5954_v2 = vrot.slane %v4628_v42, 1  ;;  %v5957_v42 = vrot.slane %v4635_v17, 7 }
 0x188   : > { %v846_v24 = vsel %vm822_vm2, %v5949_v45, %v5948_v19  ;;  %v3980_v45 = vld [vmem:[#allocation6 + $0x1d0] sm:$0xff]   ;;  %v4889_v63 = vpack.c.bf16 %v4679_v44, %v4657_v39  ;;  %v6006_v29 = vrot.slane %v4604_v30, 7 }
 0x189   : > { %v714_v6 = vsel %vm695_vm1, %v5951_v7, %v5950_v31  ;;  %v4850_v5 = vpack.c.bf16 %v845_v10, %v846_v24  ;;  %v5952_v20 = vmov %v5951_v7  ;;  %v843_v19 = vsel %vm822_vm2, %v800_v21, %v5953_v51  ;;  %3561 = vmatpush3.bf16.msra.mxu0 %v3977_v37  ;;  %v3981_v37 = vld [vmem:[#allocation6 + $0x190] sm:$0xff]  }
 0x18a   : > { %v715_v26 = vsel %vm695_vm1, %v673_v49, %v5952_v20  ;;  %v844_v10 = vsel %vm822_vm2, %v5954_v2, %v800_v21  ;;  %v4875_v20 = vpack.c.bf16 %v638_v41, %v4662_v18  ;;  %v5955_v49 = vrot.slane %v4662_v18, 7  ;;  %3562 = vmatprep.subr.bf16.mxu0 %v3980_v45 }
 0x18b   : > { %v4870_v24 = vpack.c.bf16 %v714_v6, %v715_v26  ;;  %v4872_v31 = vpack.c.bf16 %v843_v19, %v844_v10  ;;  %v5958_v41 = vrot.slane %v4635_v17, 1  ;;  %v5963_v17 = vrot.slane %v4657_v39, 7  ;;  %2920 = vmatmul.mubr.msk.bf16.gmra.mrb[24].mxu1 %vm4753_vm6, %v4705_v16 }
 0x18c   : > { %v712_v7 = vsel %vm695_vm1, %v5955_v49, %v677_v52  ;;  %v5956_v60 = vmov %v5955_v49  ;;  %2968 = vmatmul.mubr.msk.bf16.gmra.mrb[20].mxu0 %vm4906_vm7, %v4727_v27  ;;  %1554 = vmatprep.mubr.bf16.mxu1 %v4716_v36  ;;  %v6016_v16 = vrot.slane %v4614_v38, 7 }
 0x18d   : > { %v713_v21 = vsel %vm695_vm1, %v5957_v42, %v5956_v60  ;;  %v841_v6 = vsel %vm822_vm2, %v5958_v41, %v803_v1  ;;  %v5959_v26 = vmov %v5958_v41  ;;  %v5962_v60 = vrot.slane %v4679_v44, 7  ;;  %2971 = vmatprep.mubr.msk.bf16.mxu0 %vm4753_vm6, %v4738_v54  ;;  %3563 = vmatpush3.bf16.msra.mxu0 %v3981_v37 }
 0x18e   : > { %v842_v19 = vsel %vm822_vm2, %v5953_v51, %v5959_v26  ;;  %v4910_v10 = vpack.c.bf16 %v712_v7, %v713_v21  ;;  %v5964_v42 = vmov %v5963_v17  ;;  %v5965_v7 = vrot.slane %v4657_v39, 1 }
 0x18f   : > { %v4912_v49 = vpack.c.bf16 %v841_v6, %v842_v19  ;;  %v710_v11 = vsel %vm695_vm1, %v5963_v17, %v5962_v60  ;;  %v711_v58 = vsel %vm695_vm1, %v677_v52, %v5964_v42  ;;  %v840_v6 = vsel %vm822_vm2, %v803_v1, %v804_v0 }
 0x190   : > { %v4924_v41 = vpack.c.bf16 %v710_v11, %v711_v58  ;;  %v839_v21 = vsel %vm822_vm2, %v804_v0, %v5965_v7  ;;  %v5966_v26 = vrot.slane %v4532_v61, 7  ;;  %v5967_v51 = vrot.slane %v4519_v53, 7 }
 0x191   : > { %v4943_v19 = vpack.c.bf16 %v839_v21, %v840_v6  ;;  %v5969_v0 = vrot.slane %v4519_v53, 1  ;;  %v5970_v17 = vrot.slane %v4679_v44, 1  ;;  %v5972_v42 = vmov %v5965_v7  ;;  %v3984_v7 = vld [vmem:[#allocation6 + $0x1d8] sm:$0xff]  }
 0x192   : > { %v708_v52 = vsel %vm695_vm1, %v5967_v51, %v5966_v26  ;;  %v5968_v18 = vmov %v5967_v51  ;;  %v5973_v44 = vrot.slane %v4525_v57, 7  ;;  %v5974_v39 = vrot.slane %v4513_v47, 7  ;;  %3564 = vmatprep.subr.bf16.mxu0 %v3984_v7 }
 0x193   : > { %v709_v1 = vsel %vm695_vm1, %v5962_v60, %v5968_v18  ;;  %v837_v45 = vsel %vm822_vm2, %v5970_v17, %v5969_v0  ;;  %v5971_v11 = vmov %v5970_v17  ;;  %v5976_v60 = vrot.slane %v4532_v61, 7  ;;  %2923 = vmatmul.mubr.msk.bf16.gmra.mrb[28].mxu1 %vm4753_vm6, %v4738_v54 }
 0x194   : > { %v838_v58 = vsel %vm822_vm2, %v5972_v42, %v5971_v11  ;;  %v4968_v6 = vpack.c.bf16 %v708_v52, %v709_v1  ;;  %v706_v51 = vsel %vm695_vm1, %v5974_v39, %v5973_v44  ;;  %v5975_v18 = vmov %v5974_v39  ;;  %1562 = vmatprep.mubr.bf16.mxu1 %v4742_v8 }
 0x195   : > { %v4970_v26 = vpack.c.bf16 %v837_v45, %v838_v58  ;;  %v707_v52 = vsel %vm695_vm1, %v5976_v60, %v5975_v18  ;;  %v4989_v1 = vpack.c.bf16 %v4577_v40, %v4565_v28  ;;  %v5977_v0 = vrot.slane %v4513_v47, 1  ;;  %2974 = vmatmul.mubr.msk.bf16.gmra.mrb[24].mxu0 %vm4906_vm7, %v4775_v43 }
 0x196   : > { %v5978_v17 = vrot.slane %v4532_v61, 1  ;;  %v5980_v42 = vrot.slane %v4519_v53, 1  ;;  %v5003_v44 = vpack.c.bf16 %v706_v51, %v707_v52  ;;  %v5981_v18 = vrot.slane %v4577_v40, 7  ;;  %2977 = vmatprep.mubr.msk.bf16.mxu0 %vm4753_vm6, %v4784_v35 }
 0x197   : > { %v5982_v60 = vrot.slane %v4565_v28, 7  ;;  %v5984_v61 = vrot.slane %v4525_v57, 7  ;;  %v5023_v52 = vpack.c.bf16 %v4570_v34, %v4559_v22  ;;  %v6014_v8 = vrot.slane %v4670_v32, 7 }
 0x198   : > { %v835_v45 = vsel %vm822_vm2, %v5978_v17, %v5977_v0  ;;  %v5979_v11 = vmov %v5978_v17  ;;  %v3985_v17 = vld [vmem:[#allocation6 + $0x198] sm:$0xff]  }
 0x199   : > { %v836_v58 = vsel %vm822_vm2, %v5980_v42, %v5979_v11  ;;  %v704_v21 = vsel %vm695_vm1, %v5982_v60, %v5981_v18  ;;  %v5983_v0 = vmov %v5982_v60  ;;  %v5986_v11 = vrot.slane %v4525_v57, 1  ;;  %3565 = vmatpush3.bf16.msra.mxu0 %v3985_v17 }
 0x19a   : > { %v5005_v39 = vpack.c.bf16 %v835_v45, %v836_v58  ;;  %v705_v53 = vsel %vm695_vm1, %v5984_v61, %v5983_v0  ;;  %v5985_v45 = vrot.slane %v4565_v28, 1  ;;  %v5988_v18 = vrot.slane %v4513_v47, 1 }
 0x19b   : > { %v5019_v51 = vpack.c.bf16 %v704_v21, %v705_v53  ;;  %v5987_v58 = vmov %v5986_v11  ;;  %v5989_v60 = vrot.slane %v4570_v34, 7  ;;  %v5990_v0 = vrot.slane %v4559_v22, 7  ;;  %2926 = vmatmul.mubr.msk.bf16.gmra.mrb[32].mxu1 %vm4753_vm6, %v4784_v35 }
 0x19c   : > { %v833_v42 = vsel %vm822_vm2, %v5986_v11, %v5985_v45  ;;  %v834_v37 = vsel %vm822_vm2, %v5988_v18, %v5987_v58  ;;  %v5992_v45 = vrot.slane %v4577_v40, 7  ;;  %v5053_v57 = vpack.c.bf16 %v4623_v3, %v4609_v12  ;;  %1570 = vmatprep.mubr.bf16.mxu1 %v4800_v33 }
 0x19d   : > { %v5037_v21 = vpack.c.bf16 %v833_v42, %v834_v37  ;;  %v702_v61 = vsel %vm695_vm1, %v5990_v0, %v5989_v60  ;;  %v5991_v53 = vmov %v5990_v0  ;;  %v5993_v11 = vrot.slane %v4559_v22, 1  ;;  %2980 = vmatmul.mubr.msk.bf16.gmra.mrb[28].mxu0 %vm4906_vm7, %v4806_v4 }
 0x19e   : > { %v703_v47 = vsel %vm695_vm1, %v5992_v45, %v5991_v53  ;;  %v5994_v42 = vrot.slane %v4577_v40, 1  ;;  %v5996_v37 = vrot.slane %v4565_v28, 1  ;;  %v5997_v0 = vrot.slane %v4623_v3, 7  ;;  %2983 = vmatprep.mubr.msk.bf16.mxu0 %vm4753_vm6, %v4823_v62 }
 0x19f   : > { %v5055_v7 = vpack.c.bf16 %v702_v61, %v703_v47  ;;  %v5998_v53 = vrot.slane %v4609_v12, 7  ;;  %v5085_v28 = vpack.c.bf16 %v4614_v38, %v4604_v30  ;;  %v6015_v36 = vmov %v6014_v8 }
 0x1a0   : > { %v831_v58 = vsel %vm822_vm2, %v5994_v42, %v5993_v11  ;;  %v5995_v18 = vmov %v5994_v42  ;;  %v6000_v11 = vrot.slane %v4570_v34, 7  ;;  %v6001_v42 = vrot.slane %v4609_v12, 1 }
 0x1a1   : > { %v832_v60 = vsel %vm822_vm2, %v5996_v37, %v5995_v18  ;;  %v700_v61 = vsel %vm695_vm1, %v5998_v53, %v5997_v0  ;;  %v5999_v47 = vmov %v5998_v53  ;;  %v6002_v18 = vrot.slane %v4570_v34, 1  ;;  %v3989_v34 = vld [vmem:[#allocation6 + $0x1a0] sm:$0xff]  }
 0x1a2   : > { %v5075_v45 = vpack.c.bf16 %v831_v58, %v832_v60  ;;  %v701_v40 = vsel %vm695_vm1, %v6000_v11, %v5999_v47  ;;  %v3988_v58 = vld [vmem:[#allocation6 + $0x1e0] sm:$0xff]   ;;  %v6004_v53 = vrot.slane %v4559_v22, 1  ;;  %v6005_v11 = vrot.slane %v4614_v38, 7 }
 0x1a3   : > { %v829_v37 = vsel %vm822_vm2, %v6002_v18, %v6001_v42  ;;  %v5096_v60 = vpack.c.bf16 %v700_v61, %v701_v40  ;;  %v6003_v0 = vmov %v6002_v18  ;;  %v6007_v42 = vmov %v6006_v29  ;;  %3566 = vmatprep.subr.bf16.mxu0 %v3988_v58  ;;  %2929 = vmatmul.mubr.msk.bf16.gmra.mrb[36].mxu1 %vm4753_vm6, %v4823_v62 }
 0x1a4   : > { %v830_v47 = vsel %vm822_vm2, %v6004_v53, %v6003_v0  ;;  %v698_v17 = vsel %vm695_vm1, %v6006_v29, %v6005_v11  ;;  %v6008_v18 = vrot.slane %v4623_v3, 7  ;;  %v909_v22 = vrot.slane %v4703_v59, 1  ;;  %v3990_v53 = vld [vmem:[#allocation6 + $0x1e8] sm:$0xff]   ;;  %3567 = vmatpush3.bf16.msra.mxu0 %v3989_v34  ;;  %1578 = vmatprep.mubr.bf16.mxu1 %v4827_v50 }
 0x1a5   : > { %v5121_v40 = vpack.c.bf16 %v829_v37, %v830_v47  ;;  %v5127_v29 = vpack.c.bf16 %v4736_v23, %v4670_v32  ;;  %v6009_v11 = vrot.slane %v4604_v30, 1  ;;  %v6012_v47 = vrot.slane %v4609_v12, 1  ;;  %3568 = vmatprep.subr.bf16.mxu0 %v3990_v53  ;;  %v3993_v53 = vld [vmem:[#allocation6 + $0x1f0] sm:$0xff]   ;;  %2986 = vmatmul.mubr.msk.bf16.gmra.mrb[32].mxu0 %vm4906_vm7, %v4850_v5 }
 0x1a6   : > { %v699_v61 = vsel %vm695_vm1, %v6008_v18, %v6007_v42  ;;  %v6010_v42 = vrot.slane %v4623_v3, 1  ;;  %v6025_v58 = vrot.slane %v4660_v48, 1  ;;  %2989 = vmatprep.mubr.msk.bf16.mxu0 %vm4753_vm6, %v4870_v24 }
 0x1a7   : > { %v5123_v0 = vpack.c.bf16 %v698_v17, %v699_v61  ;;  %v6013_v61 = vrot.slane %v4736_v23, 7 }
 0x1a8   : > { %v827_v18 = vsel %vm822_vm2, %v6010_v42, %v6009_v11  ;;  %v6011_v37 = vmov %v6010_v42  ;;  %v697_v11 = vsel %vm695_vm1, %v6016_v16, %v6015_v36  ;;  %v6017_v42 = vrot.slane %v4670_v32, 1 }
 0x1a9   : > { %v828_v17 = vsel %vm822_vm2, %v6012_v47, %v6011_v37  ;;  %v696_v54 = vsel %vm695_vm1, %v6014_v8, %v6013_v61  ;;  %v6018_v37 = vrot.slane %v4614_v38, 1  ;;  %v6020_v61 = vrot.slane %v4604_v30, 1  ;;  %v3991_v30 = vld [vmem:[#allocation6 + $0x1a8] sm:$0xff]  }
 0x1aa   : > { %v5156_v3 = vpack.c.bf16 %v827_v18, %v828_v17  ;;  %v5158_v12 = vpack.c.bf16 %v696_v54, %v697_v11  ;;  %v6021_v54 = vrot.slane %v4703_v59, 7  ;;  %v6022_v36 = vrot.slane %v4660_v48, 7  ;;  %3569 = vmatpush3.bf16.msra.mxu0 %v3991_v30 }
 0x1ab   : > { %v825_v47 = vsel %vm822_vm2, %v6018_v37, %v6017_v42  ;;  %v6019_v8 = vmov %v6018_v37  ;;  %v6024_v11 = vrot.slane %v4736_v23, 7  ;;  %v6029_v34 = vmov %v6025_v58  ;;  %3570 = vmatprep.subr.bf16.mxu0 %v3993_v53  ;;  %2932 = vmatmul.mubr.msk.bf16.gmra.mrb[40].mxu1 %vm4753_vm6, %v4870_v24 }
 0x1ac   : > { %v826_v9 = vsel %vm822_vm2, %v6020_v61, %v6019_v8  ;;  %v903_v18 = vsel %vm695_vm1, %v6022_v36, %v6021_v54  ;;  %v6023_v17 = vmov %v6022_v36  ;;  %v6028_v8 = vrot.slane %v4670_v32, 1  ;;  %v3994_v32 = vld [vmem:[#allocation6 + $0x1b0] sm:$0xff]   ;;  %1586 = vmatprep.mubr.bf16.mxu1 %v4875_v20 }
 0x1ad   : > { %v5172_v16 = vpack.c.bf16 %v825_v47, %v826_v9  ;;  %v904_v38 = vsel %vm695_vm1, %v6024_v11, %v6023_v17  ;;  %v6026_v9 = vrot.slane %v4736_v23, 1  ;;  %v910_v54 = vsel %vm822_vm2, %v6029_v34, %v909_v22  ;;  %2992 = vmatmul.mubr.msk.bf16.gmra.mrb[36].mxu0 %vm4906_vm7, %v4872_v31  ;;  %v6034_v34 = vld [vmem:[#allocation15_spill] sm:$0xff] }
 0x1ae   : > { %v5192_v37 = vpack.c.bf16 %v903_v18, %v904_v38  ;;  %v6030_v36 = vrot.slane %v4522_v55, 1  ;;  %v5214_v23 = vpack.c.bf16 %v4703_v59, %v4660_v48  ;;  %3571 = vmatpush3.bf16.msra.mxu0 %v3994_v32  ;;  %v3996_v55 = vld [vmem:[#allocation6 + $0x1b8] sm:$0xff]   ;;  %2995 = vmatprep.mubr.msk.bf16.mxu0 %vm4753_vm6, %v4910_v10  ;;  %v3238_v48 = vpop.f32.mrb[16].mxu1 }
 0x1af   : > { %v823_v42 = vsel %vm822_vm2, %v6026_v9, %v6025_v58  ;;  %v6027_v47 = vmov %v6026_v9  ;;  %3572 = vmatprep.subr.bf16.mxu0 %v3995_v46  ;;  %v3239_v59 = vpop.f32.mrb[17].mxu1  ;;  %v3997_v9 = vld [vmem:[#allocation6 + $0x208] sm:$0xff]  }
 0x1b0   : > { %v824_v61 = vsel %vm822_vm2, %v6028_v8, %v6027_v47  ;;  %v911_v17 = vsel %vm822_vm2, %v909_v22, %v6030_v36  ;;  %v5283_v22 = vadd.f32 %v3239_v59, %v3238_v48  ;;  %v3241_v38 = vpop.f32.mrb[18].mxu1  ;;  %v3999_v47 = vld [vmem:[#allocation6 + $0x218] sm:$0xff]   ;;  %v4000_v8 = vld [vmem:[#allocation6 + $0x220] sm:$0xff]   ;;  %v4002_v36 = vld [vmem:[#allocation6 + $0x230] sm:$0xff]  }
 0x1b1   : > { %v5208_v18 = vpack.c.bf16 %v823_v42, %v824_v61  ;;  %v5210_v11 = vpack.c.bf16 %v911_v17, %v910_v54  ;;  %v3242_v30 = vpop.f32.mrb[19].mxu1  ;;  %v6031_v42 = vld [vmem:[#allocation12_spill] sm:$0xff]  ;;  %v4001_v61 = vld [vmem:[#allocation6 + $0x228] sm:$0xff]   ;;  %v4003_v17 = vld [vmem:[#allocation6 + $0x238] sm:$0xff]  }
 0x1b2   : > { %3573 = vmatpush3.bf16.msra.mxu0 %v3996_v55  ;;  %v5288_v58 = vadd.f32 %v3242_v30, %v3241_v38  ;;  %v6035_v54 = vld [vmem:[#allocation16_spill] sm:$0xff] }
 0x1b3   : > { %2935 = vmatmul.mubr.msk.bf16.gmra.mrb[44].mxu1 %vm4753_vm6, %v4910_v10 }
 0x1b4   : > { %1594 = vmatprep.mubr.bf16.mxu1 %v4889_v63 }
 0x1b5   : > { %2998 = vmatmul.mubr.msk.bf16.gmra.mrb[40].mxu0 %vm4906_vm7, %v4912_v49 }
 0x1b6   : > { %3001 = vmatprep.mubr.msk.bf16.mxu0 %vm4753_vm6, %v4924_v41 }
 0x1bb   : > { %2938 = vmatmul.mubr.msk.bf16.gmra.mrb[48].mxu1 %vm4753_vm6, %v4924_v41 }
 0x1bc   : > { %1602 = vmatprep.mubr.bf16.mxu1 %v4549_v14 }
 0x1bd   : > { %3004 = vmatmul.mubr.msk.bf16.gmra.mrb[44].mxu0 %vm4906_vm7, %v4943_v19 }
 0x1be   : > { %3007 = vmatprep.mubr.msk.bf16.mxu0 %vm4753_vm6, %v4968_v6 }
 0x1c3   : > { %2941 = vmatmul.mubr.msk.bf16.gmra.mrb[52].mxu1 %vm4753_vm6, %v4968_v6 }
 0x1c4   : > { %1610 = vmatprep.mubr.bf16.mxu1 %v4553_v15 }
 0x1c5   : > { %3010 = vmatmul.mubr.msk.bf16.gmra.mrb[48].mxu0 %vm4906_vm7, %v4970_v26 }
 0x1c6   : > { %3013 = vmatprep.mubr.msk.bf16.mxu0 %vm4753_vm6, %v5003_v44 }
 0x1cb   : > { %2944 = vmatmul.mubr.msk.bf16.gmra.mrb[56].mxu1 %vm4753_vm6, %v5003_v44 }
 0x1cc   : > { %1618 = vmatprep.mubr.bf16.mxu1 %v4989_v1 }
 0x1cd   : > { %3016 = vmatmul.mubr.msk.bf16.gmra.mrb[52].mxu0 %vm4906_vm7, %v5005_v39 }
 0x1ce   : > { %3019 = vmatprep.mubr.msk.bf16.mxu0 %vm4753_vm6, %v5019_v51 }
 0x1d3   : > { %2947 = vmatmul.mubr.msk.bf16.gmra.mrb[60].mxu1 %vm4753_vm6, %v5019_v51 }
 0x1d4   : > { %1626 = vmatprep.mubr.bf16.mxu1 %v5023_v52 }
 0x1d5   : > { %3022 = vmatmul.mubr.msk.bf16.gmra.mrb[56].mxu0 %vm4906_vm7, %v5037_v21 }
 0x1d6   : > { %3025 = vmatprep.mubr.msk.bf16.mxu0 %vm4753_vm6, %v5055_v7 }
 0x1db   : > { %2950 = vmatmul.mubr.msk.bf16.gmra.mrb[64].mxu1 %vm4753_vm6, %v5055_v7 }
 0x1dc   : > { %1634 = vmatprep.mubr.bf16.mxu1 %v5053_v57 }
 0x1dd   : > { %3028 = vmatmul.mubr.msk.bf16.gmra.mrb[60].mxu0 %vm4906_vm7, %v5075_v45 }
 0x1de   : > { %3031 = vmatprep.mubr.msk.bf16.mxu0 %vm4753_vm6, %v5096_v60 }
 0x1e3   : > { %2953 = vmatmul.mubr.msk.bf16.gmra.mrb[68].mxu1 %vm4753_vm6, %v5096_v60 }
 0x1e4   : > { %1642 = vmatprep.mubr.bf16.mxu1 %v5085_v28 }
 0x1e5   : > { %3034 = vmatmul.mubr.msk.bf16.gmra.mrb[64].mxu0 %vm4906_vm7, %v5121_v40 }
 0x1e6   : > { %3037 = vmatprep.mubr.msk.bf16.mxu0 %vm4753_vm6, %v5123_v0 }
 0x1eb   : > { %2956 = vmatmul.mubr.msk.bf16.gmra.mrb[72].mxu1 %vm4753_vm6, %v5123_v0 }
 0x1ec   : > { %1650 = vmatprep.mubr.bf16.mxu1 %v5127_v29 }
 0x1ed   : > { %3040 = vmatmul.mubr.msk.bf16.gmra.mrb[68].mxu0 %vm4906_vm7, %v5156_v3 }
 0x1ee   : > { %3043 = vmatprep.mubr.msk.bf16.mxu0 %vm4753_vm6, %v5158_v12 }
 0x1f3   : > { %2959 = vmatmul.mubr.msk.bf16.gmra.mrb[76].mxu1 %vm4753_vm6, %v5158_v12 }
 0x1f4   : > { %3055 = vmatprep.mubr.msk.bf16.mxu1 %vm4906_vm7, %v4727_v27  ;;  %v3998_v27 = vld [vmem:[#allocation6 + $0x210] sm:$0xff]  }
 0x1f5   : > { %3046 = vmatmul.mubr.msk.bf16.gmra.mrb[72].mxu0 %vm4906_vm7, %v5172_v16 }
 0x1f6   : > { %3049 = vmatprep.mubr.msk.bf16.mxu0 %vm4753_vm6, %v5192_v37 }
 0x1fb   : > { %1853 = vmatmul.mubr.bf16.vlgmr.msra.gmra.mrb[80].mxu1 %v4591_v56  ;;  %v6033_v56 = vld [vmem:[#allocation14_spill] sm:$0xff] }
 0x1fc   : > { %3755 = vmatpush3.bf16.msra.mxu1 %v4665_v13  ;;  %3058 = vmatprep.mubr.msk.bf16.mxu1 %vm4906_vm7, %v4775_v43  ;;  %v6032_v13 = vld [vmem:[#allocation13_spill] sm:$0xff] }
 0x1fd   : > { %3052 = vmatmul.mubr.msk.bf16.gmra.mrb[76].mxu0 %vm4906_vm7, %v5208_v18  ;;  %3756 = vmatprep.subr.bf16.mxu1 %v3997_v9 }
 0x1fe   : > { %2013 = vmatprep.mubr.bf16.mxu0 %v6031_v42 }
 0x200   : > { %3757 = vmatpush3.bf16.msra.mxu1 %v3997_v9 }
 0x201   : > { %3758 = vmatprep.subr.bf16.mxu1 %v3998_v27 }
 0x203   : > { %1861 = vmatmul.mubr.bf16.gmra.mrb[84].mxu1 %v6031_v42 }
 0x204   : > { %3061 = vmatprep.mubr.msk.bf16.mxu1 %vm4906_vm7, %v4806_v4  ;;  %3759 = vmatpush3.bf16.msra.mxu1 %v3998_v27 }
 0x205   : > { %3103 = vmatmul.mubr.msk.bf16.vlgmr.msra.gmra.mrb[80].mxu0 %vm4753_vm6, %v6032_v13  ;;  %3760 = vmatprep.subr.bf16.mxu1 %v3999_v47 }
 0x206   : > { %2021 = vmatprep.mubr.bf16.mxu0 %v6033_v56 }
 0x208   : > { %3761 = vmatpush3.bf16.msra.mxu1 %v3999_v47 }
 0x209   : > { %3762 = vmatprep.subr.bf16.mxu1 %v4000_v8 }
 0x20b   : > { %1869 = vmatmul.mubr.bf16.gmra.mrb[88].mxu1 %v6033_v56 }
 0x20c   : > { %3064 = vmatprep.mubr.msk.bf16.mxu1 %vm4906_vm7, %v4850_v5  ;;  %3763 = vmatpush3.bf16.msra.mxu1 %v4000_v8 }
 0x20d   : > { %3106 = vmatmul.mubr.msk.bf16.gmra.mrb[84].mxu0 %vm4753_vm6, %v6034_v34  ;;  %3764 = vmatprep.subr.bf16.mxu1 %v4001_v61 }
 0x20e   : > { %2029 = vmatprep.mubr.bf16.mxu0 %v6035_v54 }
 0x210   : > { %3765 = vmatpush3.bf16.msra.mxu1 %v4001_v61 }
 0x211   : > { %3766 = vmatprep.subr.bf16.mxu1 %v4002_v36 }
 0x213   : > { %1877 = vmatmul.mubr.bf16.gmra.mrb[92].mxu1 %v6035_v54 }
 0x214   : > { %3067 = vmatprep.mubr.msk.bf16.mxu1 %vm4906_vm7, %v4872_v31  ;;  %3767 = vmatpush3.bf16.msra.mxu1 %v4002_v36 }
 0x215   : > { %3109 = vmatmul.mubr.msk.bf16.gmra.mrb[88].mxu0 %vm4753_vm6, %v4784_v35  ;;  %3768 = vmatprep.subr.bf16.mxu1 %v4003_v17 }
 0x216   : > { %2037 = vmatprep.mubr.bf16.mxu0 %v4800_v33 }
 0x218   : > { %3769 = vmatpush3.bf16.msra.mxu1 %v4003_v17 }
 0x21b   : > { %1885 = vmatmul.mubr.bf16.gmra.mrb[96].mxu1 %v4800_v33 }
 0x21c   : > { %3070 = vmatprep.mubr.msk.bf16.mxu1 %vm4906_vm7, %v4912_v49 }
 0x21d   : > { %3112 = vmatmul.mubr.msk.bf16.gmra.mrb[92].mxu0 %vm4753_vm6, %v4823_v62 }
 0x21e   : > { %2045 = vmatprep.mubr.bf16.mxu0 %v4827_v50 }
 0x223   : > { %1893 = vmatmul.mubr.bf16.gmra.mrb[100].mxu1 %v4827_v50 }
 0x224   : > { %3073 = vmatprep.mubr.msk.bf16.mxu1 %vm4906_vm7, %v4943_v19 }
 0x225   : > { %3115 = vmatmul.mubr.msk.bf16.gmra.mrb[96].mxu0 %vm4753_vm6, %v4870_v24 }
 0x226   : > { %2053 = vmatprep.mubr.bf16.mxu0 %v4875_v20 }
 0x22b   : > { %1901 = vmatmul.mubr.bf16.gmra.mrb[104].mxu1 %v4875_v20 }
 0x22c   : > { %3076 = vmatprep.mubr.msk.bf16.mxu1 %vm4906_vm7, %v4970_v26 }
 0x22d   : > { %3118 = vmatmul.mubr.msk.bf16.gmra.mrb[100].mxu0 %vm4753_vm6, %v4910_v10 }
 0x22e   : > { %2061 = vmatprep.mubr.bf16.mxu0 %v4889_v63 }
 0x233   : > { %1909 = vmatmul.mubr.bf16.gmra.mrb[108].mxu1 %v4889_v63 }
 0x234   : > { %3079 = vmatprep.mubr.msk.bf16.mxu1 %vm4906_vm7, %v5005_v39 }
 0x235   : > { %3121 = vmatmul.mubr.msk.bf16.gmra.mrb[104].mxu0 %vm4753_vm6, %v4924_v41 }
 0x236   : > { %2069 = vmatprep.mubr.bf16.mxu0 %v4549_v14 }
 0x23b   : > { %1917 = vmatmul.mubr.bf16.gmra.mrb[112].mxu1 %v4549_v14  ;;  %v5442_v14 = vld [vmem:[%s5903_s4] ss:$0 sm:$0xff] }
 0x23c   : > { %3082 = vmatprep.mubr.msk.bf16.mxu1 %vm4906_vm7, %v5037_v21  ;;  %v1533_v20 = vadd.f32 %v5283_v22, %v5442_v14 }
 0x23d   : > { %3124 = vmatmul.mubr.msk.bf16.gmra.mrb[108].mxu0 %vm4753_vm6, %v4968_v6 }
 0x23e   : > { %2077 = vmatprep.mubr.bf16.mxu0 %v4553_v15 }
 0x243   : > { %1925 = vmatmul.mubr.bf16.gmra.mrb[116].mxu1 %v4553_v15 }
 0x244   : > { %3085 = vmatprep.mubr.msk.bf16.mxu1 %vm4906_vm7, %v5075_v45 }
 0x245   : > { %3127 = vmatmul.mubr.msk.bf16.gmra.mrb[112].mxu0 %vm4753_vm6, %v5003_v44  ;;  %v4004_v44 = vld [vmem:[#allocation7] sm:$0xff]  }
 0x246   : > { %2085 = vmatprep.mubr.bf16.mxu0 %v4989_v1  ;;  %3802 = vmatprep.subr.bf16.mxu0 %v4004_v44 }
 0x247   : > { %3803 = vmatpush3.bf16.msra.mxu0 %v4004_v44 }
 0x24b   : > { %1933 = vmatmul.mubr.bf16.gmra.mrb[120].mxu1 %v4989_v1 }
 0x24c   : > { %3088 = vmatprep.mubr.msk.bf16.mxu1 %vm4906_vm7, %v5121_v40 }
 0x24d   : > { %3130 = vmatmul.mubr.msk.bf16.gmra.mrb[116].mxu0 %vm4753_vm6, %v5019_v51  ;;  %v1536_v51 = vadd.f32 %v5288_v58, %v5442_v14 }
 0x24e   : > { %2093 = vmatprep.mubr.bf16.mxu0 %v5023_v52 }
 0x253   : > { %1941 = vmatmul.mubr.bf16.gmra.mrb[124].mxu1 %v5023_v52 }
 0x254   : > { %3091 = vmatprep.mubr.msk.bf16.mxu1 %vm4906_vm7, %v5156_v3 }
 0x255   : > { %3133 = vmatmul.mubr.msk.bf16.gmra.mrb[120].mxu0 %vm4753_vm6, %v5055_v7 }
 0x256   : > { %2101 = vmatprep.mubr.bf16.mxu0 %v5053_v57  ;;  %v3244_v15 = vpop.f32.mrb[20].mxu1 }
 0x257   : > { %v3245_v35 = vpop.f32.mrb[21].mxu1  ;;  %v3350_v33 = vpop.f32.mrb[16].mxu0 }
 0x258   : > { %v3246_v62 = vadd.f32 %v3245_v35, %v3244_v15  ;;  %v3247_v50 = vpop.f32.mrb[22].mxu1  ;;  %v3351_v24 = vpop.f32.mrb[17].mxu0 }
 0x259   : > { %v3352_v63 = vadd.f32 %v3351_v24, %v3350_v33  ;;  %v3248_v10 = vpop.f32.mrb[23].mxu1  ;;  %v3353_v41 = vpop.f32.mrb[18].mxu0 }
 0x25a   : > { %v3249_v6 = vadd.f32 %v3248_v10, %v3247_v50  ;;  %v3354_v1 = vpop.f32.mrb[19].mxu0  ;;  %v1541_v22 = vadd.f32 %v3246_v62, %v5442_v14  ;;  %v4005_v50 = vld [vmem:[#allocation7 + $0x8] sm:$0xff]  }
 0x25b   : > { %v5448_v52 = vadd.f32 %v3352_v63, %v1533_v20  ;;  %v3355_v7 = vadd.f32 %v3354_v1, %v3353_v41  ;;  %1949 = vmatmul.mubr.bf16.gmra.mrb[128].mxu1 %v5053_v57  ;;  %3804 = vmatprep.subr.bf16.mxu0 %v4005_v50 }
 0x25c   : > { %3094 = vmatprep.mubr.msk.bf16.mxu1 %vm4906_vm7, %v5172_v16  ;;  %3805 = vmatpush3.bf16.msra.mxu0 %v4005_v50 }
 0x25d   : > { %3136 = vmatmul.mubr.msk.bf16.gmra.mrb[124].mxu0 %vm4753_vm6, %v5096_v60  ;;  %v5457_v53 = vadd.f32 %v3355_v7, %v1536_v51  ;;  %v1544_v60 = vadd.f32 %v3249_v6, %v5442_v14 }
 0x25e   : > { %2109 = vmatprep.mubr.bf16.mxu0 %v5085_v28  ;;  %v3250_v32 = vpop.f32.mrb[24].mxu1 }
 0x25f   : > { %v3251_v46 = vpop.f32.mrb[25].mxu1  ;;  %v3356_v55 = vpop.f32.mrb[20].mxu0 }
 0x260   : > { %v3252_v48 = vadd.f32 %v3251_v46, %v3250_v32  ;;  %v3253_v59 = vpop.f32.mrb[26].mxu1  ;;  %v3357_v57 = vpop.f32.mrb[21].mxu0 }
 0x261   : > { %v3358_v38 = vadd.f32 %v3357_v57, %v3356_v55  ;;  %v3254_v30 = vpop.f32.mrb[27].mxu1  ;;  %v3359_v58 = vpop.f32.mrb[22].mxu0 }
 0x262   : > { %v3255_v9 = vadd.f32 %v3254_v30, %v3253_v59  ;;  %v3360_v42 = vpop.f32.mrb[23].mxu0 }
 0x263   : > { %v5462_v27 = vadd.f32 %v3358_v38, %v1541_v22  ;;  %v3361_v47 = vadd.f32 %v3360_v42, %v3359_v58  ;;  %1957 = vmatmul.mubr.bf16.gmra.mrb[132].mxu1 %v5085_v28  ;;  %v1549_v28 = vadd.f32 %v3252_v48, %v5442_v14  ;;  %v6036_v38 = vmov 0.0|0.0  }
 0x264   : > { %3097 = vmatprep.mubr.msk.bf16.mxu1 %vm4906_vm7, %v5208_v18 }
 0x265   : > { %3139 = vmatmul.mubr.msk.bf16.gmra.mrb[128].mxu0 %vm4753_vm6, %v5123_v0  ;;  %v5471_v13 = vadd.f32 %v3361_v47, %v1544_v60  ;;  %v1552_v0 = vadd.f32 %v3255_v9, %v5442_v14 }
 0x266   : > { %2117 = vmatprep.mubr.bf16.mxu0 %v5127_v29  ;;  %v3256_v56 = vpop.f32.mrb[28].mxu1 }
 0x267   : > { %v3257_v8 = vpop.f32.mrb[29].mxu1 }
 0x268   : > { %v3362_v61 = vpop.f32.mrb[24].mxu0  ;;  %v3258_v34 = vadd.f32 %v3257_v8, %v3256_v56  ;;  %v3259_v54 = vpop.f32.mrb[30].mxu1 }
 0x269   : > { %v3363_v36 = vpop.f32.mrb[25].mxu0  ;;  %v3260_v15 = vpop.f32.mrb[31].mxu1 }
 0x26a   : > { %v3364_v17 = vadd.f32 %v3363_v36, %v3362_v61  ;;  %v3365_v35 = vpop.f32.mrb[26].mxu0  ;;  %v3261_v33 = vadd.f32 %v3260_v15, %v3259_v54  ;;  %v1557_v51 = vadd.f32 %v3258_v34, %v5442_v14  ;;  %v4006_v34 = vld [vmem:[#allocation7 + $0x10] sm:$0xff]  }
 0x26b   : > { %v3366_v62 = vpop.f32.mrb[27].mxu0  ;;  %1965 = vmatmul.mubr.bf16.gmra.mrb[136].mxu1 %v5127_v29  ;;  %3806 = vmatprep.subr.bf16.mxu0 %v4006_v34 }
 0x26c   : > { %v5476_v24 = vadd.f32 %v3364_v17, %v1549_v28  ;;  %v3367_v20 = vadd.f32 %v3366_v62, %v3365_v35  ;;  %3100 = vmatprep.mubr.msk.bf16.mxu1 %vm4906_vm7, %v5210_v11  ;;  %3807 = vmatpush3.bf16.msra.mxu0 %v4006_v34 }
 0x26d   : > { %3142 = vmatmul.mubr.msk.bf16.gmra.mrb[132].mxu0 %vm4753_vm6, %v5158_v12  ;;  %v1560_v12 = vadd.f32 %v3261_v33, %v5442_v14 }
 0x26e   : > { %v5485_v63 = vadd.f32 %v3367_v20, %v1552_v0  ;;  %2125 = vmatprep.mubr.bf16.mxu0 %v5214_v23  ;;  %v3262_v10 = vpop.f32.mrb[32].mxu1 }
 0x26f   : > { %v3263_v41 = vpop.f32.mrb[33].mxu1 }
 0x270   : > { %v3368_v6 = vpop.f32.mrb[28].mxu0  ;;  %v3264_v1 = vadd.f32 %v3263_v41, %v3262_v10  ;;  %v3265_v44 = vpop.f32.mrb[34].mxu1 }
 0x271   : > { %v3369_v29 = vpop.f32.mrb[29].mxu0  ;;  %v3266_v32 = vpop.f32.mrb[35].mxu1 }
 0x272   : > { %v3370_v7 = vadd.f32 %v3369_v29, %v3368_v6  ;;  %v3371_v46 = vpop.f32.mrb[30].mxu0  ;;  %v3267_v55 = vadd.f32 %v3266_v32, %v3265_v44 }
 0x273   : > { %v3372_v48 = vpop.f32.mrb[31].mxu0  ;;  %1973 = vmatmul.mubr.bf16.gmra.mrb[140].mxu1 %v5214_v23  ;;  %v1565_v23 = vadd.f32 %v3264_v1, %v5442_v14 }
 0x274   : > { %v5490_v59 = vadd.f32 %v3370_v7, %v1557_v51  ;;  %v3373_v57 = vadd.f32 %v3372_v48, %v3371_v46  ;;  %3770 = vmatprep.mubr.msk.bf16.mxu1 %vm4906_vm7, %v4775_v43  ;;  %v1568_v43 = vadd.f32 %v3267_v55, %v5442_v14 }
 0x275   : > { %3145 = vmatmul.mubr.msk.bf16.gmra.mrb[136].mxu0 %vm4753_vm6, %v5192_v37 }
 0x276   : > { %v5499_v22 = vadd.f32 %v3373_v57, %v1560_v12  ;;  %2133 = vmatprep.mubr.bf16.mxu0 %v6036_v38  ;;  %v3268_v30 = vpop.f32.mrb[36].mxu1 }
 0x277   : > { %v3269_v58 = vpop.f32.mrb[37].mxu1 }
 0x278   : > { %v3374_v9 = vpop.f32.mrb[32].mxu0  ;;  %v3270_v42 = vadd.f32 %v3269_v58, %v3268_v30  ;;  %v3271_v60 = vpop.f32.mrb[38].mxu1 }
 0x279   : > { %v3375_v47 = vpop.f32.mrb[33].mxu0  ;;  %v3272_v8 = vpop.f32.mrb[39].mxu1 }
 0x27a   : > { %v3376_v56 = vadd.f32 %v3375_v47, %v3374_v9  ;;  %v3377_v25 = vpop.f32.mrb[34].mxu0  ;;  %v3273_v37 = vadd.f32 %v3272_v8, %v3271_v60  ;;  %v1573_v0 = vadd.f32 %v3270_v42, %v5442_v14 }
 0x27b   : > { %v3378_v61 = vpop.f32.mrb[35].mxu0  ;;  %3771 = vmatmul.mubr.msk.bf16.vlgmr.msra.gmra.mrb[144].mxu1 %vm4906_vm7, %v4806_v4 }
 0x27c   : > { %v5504_v54 = vadd.f32 %v3376_v56, %v1565_v23  ;;  %v3379_v36 = vadd.f32 %v3378_v61, %v3377_v25  ;;  %3774 = vmatprep.mubr.msk.bf16.mxu1 %vm4906_vm7, %v4850_v5  ;;  %v1576_v1 = vadd.f32 %v3273_v37, %v5442_v14 }
 0x27d   : > { %2134 = vmatmul.mubr.bf16.gmra.mrb[140].mxu0 %v6036_v38 }
 0x27e   : > { %v5513_v28 = vadd.f32 %v3379_v36, %v1568_v43  ;;  %v3274_v17 = vpop.f32.mrb[40].mxu1 }
 0x27f   : > { %v3275_v15 = vpop.f32.mrb[41].mxu1 }
 0x280   : > { %v3380_v35 = vpop.f32.mrb[36].mxu0  ;;  %v3276_v33 = vadd.f32 %v3275_v15, %v3274_v17  ;;  %v3277_v62 = vpop.f32.mrb[42].mxu1 }
 0x281   : > { %v3381_v50 = vpop.f32.mrb[37].mxu0  ;;  %v3278_v4 = vpop.f32.mrb[43].mxu1 }
 0x282   : > { %v3382_v20 = vadd.f32 %v3381_v50, %v3380_v35  ;;  %v3383_v10 = vpop.f32.mrb[38].mxu0  ;;  %v3279_v41 = vadd.f32 %v3278_v4, %v3277_v62  ;;  %v1581_v12 = vadd.f32 %v3276_v33, %v5442_v14 }
 0x283   : > { %v3384_v6 = vpop.f32.mrb[39].mxu0  ;;  %3775 = vmatmul.mubr.msk.bf16.gmra.mrb[148].mxu1 %vm4906_vm7, %v4872_v31  ;;  %v4007_v31 = vld [vmem:[#allocation7 + $0x18] sm:$0xff]  }
 0x284   : > { %v5517_v5 = vadd.f32 %v3382_v20, %v1573_v0  ;;  %v3385_v44 = vadd.f32 %v3384_v6, %v3383_v10  ;;  %3778 = vmatprep.mubr.msk.bf16.mxu1 %vm4906_vm7, %v4912_v49  ;;  %v1584_v60 = vadd.f32 %v3279_v41, %v5442_v14  ;;  %3808 = vmatprep.subr.bf16.mxu0 %v4007_v31 }
 0x285   : > { %3809 = vmatpush3.bf16.msra.mxu0 %v4007_v31 }
 0x286   : > { %v5525_v29 = vadd.f32 %v3385_v44, %v1576_v1  ;;  %v3280_v51 = vpop.f32.mrb[44].mxu1 }
 0x287   : > { %v3281_v7 = vpop.f32.mrb[45].mxu1 }
 0x288   : > { %v3386_v32 = vpop.f32.mrb[40].mxu0  ;;  %v3282_v46 = vadd.f32 %v3281_v7, %v3280_v51  ;;  %v3283_v55 = vpop.f32.mrb[46].mxu1 }
 0x289   : > { %v3387_v48 = vpop.f32.mrb[41].mxu0  ;;  %v3284_v30 = vpop.f32.mrb[47].mxu1 }
 0x28a   : > { %v3388_v57 = vadd.f32 %v3387_v48, %v3386_v32  ;;  %v3389_v58 = vpop.f32.mrb[42].mxu0  ;;  %v3285_v9 = vadd.f32 %v3284_v30, %v3283_v55  ;;  %v1589_v43 = vadd.f32 %v3282_v46, %v5442_v14 }
 0x28b   : > { %v3390_v42 = vpop.f32.mrb[43].mxu0  ;;  %3779 = vmatmul.mubr.msk.bf16.gmra.mrb[152].mxu1 %vm4906_vm7, %v4943_v19 }
 0x28c   : > { %v5529_v47 = vadd.f32 %v3388_v57, %v1581_v12  ;;  %v3391_v49 = vadd.f32 %v3390_v42, %v3389_v58  ;;  %3782 = vmatprep.mubr.msk.bf16.mxu1 %vm4906_vm7, %v4970_v26  ;;  %v1592_v33 = vadd.f32 %v3285_v9, %v5442_v14 }
 0x28e   : > { %v5537_v23 = vadd.f32 %v3391_v49, %v1584_v60  ;;  %v3286_v56 = vpop.f32.mrb[48].mxu1 }
 0x28f   : > { %v3287_v8 = vpop.f32.mrb[49].mxu1 }
 0x290   : > { %v3392_v25 = vpop.f32.mrb[44].mxu0  ;;  %v3288_v37 = vadd.f32 %v3287_v8, %v3286_v56  ;;  %v3289_v61 = vpop.f32.mrb[50].mxu1 }
 0x291   : > { %v3393_v34 = vpop.f32.mrb[45].mxu0  ;;  %v3290_v17 = vpop.f32.mrb[51].mxu1 }
 0x292   : > { %v3394_v36 = vadd.f32 %v3393_v34, %v3392_v25  ;;  %v3395_v15 = vpop.f32.mrb[46].mxu0  ;;  %v3291_v19 = vadd.f32 %v3290_v17, %v3289_v61  ;;  %v1597_v1 = vadd.f32 %v3288_v37, %v5442_v14 }
 0x293   : > { %v3396_v35 = vpop.f32.mrb[47].mxu0  ;;  %3783 = vmatmul.mubr.msk.bf16.gmra.mrb[156].mxu1 %vm4906_vm7, %v5005_v39  ;;  %v4008_v39 = vld [vmem:[#allocation7 + $0x20] sm:$0xff]  }
 0x294   : > { %v5541_v26 = vadd.f32 %v3394_v36, %v1589_v43  ;;  %v3397_v62 = vadd.f32 %v3396_v35, %v3395_v15  ;;  %3786 = vmatprep.mubr.msk.bf16.mxu1 %vm4906_vm7, %v5037_v21  ;;  %v1600_v55 = vadd.f32 %v3291_v19, %v5442_v14  ;;  %3810 = vmatprep.subr.bf16.mxu0 %v4008_v39 }
 0x295   : > { %3811 = vmatpush3.bf16.msra.mxu0 %v4008_v39 }
 0x296   : > { %v5549_v50 = vadd.f32 %v3397_v62, %v1592_v33  ;;  %v3292_v0 = vpop.f32.mrb[52].mxu1 }
 0x297   : > { %v3293_v20 = vpop.f32.mrb[53].mxu1 }
 0x298   : > { %v3398_v4 = vpop.f32.mrb[48].mxu0  ;;  %v3294_v10 = vadd.f32 %v3293_v20, %v3292_v0  ;;  %v3295_v41 = vpop.f32.mrb[54].mxu1 }
 0x299   : > { %v3399_v6 = vpop.f32.mrb[49].mxu0  ;;  %v3296_v51 = vpop.f32.mrb[55].mxu1 }
 0x29a   : > { %v3400_v44 = vadd.f32 %v3399_v6, %v3398_v4  ;;  %v3401_v7 = vpop.f32.mrb[50].mxu0  ;;  %v3297_v32 = vadd.f32 %v3296_v51, %v3295_v41  ;;  %v1605_v60 = vadd.f32 %v3294_v10, %v5442_v14 }
 0x29b   : > { %v3402_v46 = vpop.f32.mrb[51].mxu0  ;;  %3787 = vmatmul.mubr.msk.bf16.gmra.mrb[160].mxu1 %vm4906_vm7, %v5075_v45 }
 0x29c   : > { %v5553_v48 = vadd.f32 %v3400_v44, %v1597_v1  ;;  %v3403_v21 = vadd.f32 %v3402_v46, %v3401_v7  ;;  %3790 = vmatprep.mubr.msk.bf16.mxu1 %vm4906_vm7, %v5121_v40  ;;  %v1608_v37 = vadd.f32 %v3297_v32, %v5442_v14 }
 0x29e   : > { %v5561_v12 = vadd.f32 %v3403_v21, %v1600_v55  ;;  %v3298_v57 = vpop.f32.mrb[56].mxu1 }
 0x29f   : > { %v3299_v30 = vpop.f32.mrb[57].mxu1 }
 0x2a0   : > { %v3404_v58 = vpop.f32.mrb[52].mxu0  ;;  %v3300_v9 = vadd.f32 %v3299_v30, %v3298_v57  ;;  %v3301_v42 = vpop.f32.mrb[58].mxu1 }
 0x2a1   : > { %v3405_v31 = vpop.f32.mrb[53].mxu0  ;;  %v3302_v56 = vpop.f32.mrb[59].mxu1 }
 0x2a2   : > { %v3406_v49 = vadd.f32 %v3405_v31, %v3404_v58  ;;  %v3407_v8 = vpop.f32.mrb[54].mxu0  ;;  %v3303_v45 = vadd.f32 %v3302_v56, %v3301_v42  ;;  %v1613_v33 = vadd.f32 %v3300_v9, %v5442_v14 }
 0x2a3   : > { %v3408_v25 = vpop.f32.mrb[55].mxu0  ;;  %3791 = vmatmul.mubr.msk.bf16.gmra.mrb[164].mxu1 %vm4906_vm7, %v5156_v3  ;;  %v4009_v3 = vld [vmem:[#allocation7 + $0x28] sm:$0xff]  }
 0x2a4   : > { %v5565_v40 = vadd.f32 %v3406_v49, %v1605_v60  ;;  %v3409_v61 = vadd.f32 %v3408_v25, %v3407_v8  ;;  %3794 = vmatprep.mubr.msk.bf16.mxu1 %vm4906_vm7, %v5172_v16  ;;  %v1616_v41 = vadd.f32 %v3303_v45, %v5442_v14  ;;  %3812 = vmatprep.subr.bf16.mxu0 %v4009_v3 }
 0x2a5   : > { %3813 = vmatpush3.bf16.msra.mxu0 %v4009_v3 }
 0x2a6   : > { %v5573_v34 = vadd.f32 %v3409_v61, %v1608_v37  ;;  %v3304_v43 = vpop.f32.mrb[60].mxu1 }
 0x2a7   : > { %v3305_v36 = vpop.f32.mrb[61].mxu1 }
 0x2a8   : > { %v3410_v17 = vpop.f32.mrb[56].mxu0  ;;  %v3306_v15 = vadd.f32 %v3305_v36, %v3304_v43  ;;  %v3307_v19 = vpop.f32.mrb[62].mxu1 }
 0x2a9   : > { %v3411_v35 = vpop.f32.mrb[57].mxu0  ;;  %v3308_v0 = vpop.f32.mrb[63].mxu1 }
 0x2aa   : > { %v3412_v62 = vadd.f32 %v3411_v35, %v3410_v17  ;;  %v3413_v20 = vpop.f32.mrb[58].mxu0  ;;  %v3309_v4 = vadd.f32 %v3308_v0, %v3307_v19  ;;  %v1621_v55 = vadd.f32 %v3306_v15, %v5442_v14  ;;  %v4010_v15 = vld [vmem:[#allocation7 + $0x30] sm:$0xff]  }
 0x2ab   : > { %v3414_v10 = vpop.f32.mrb[59].mxu0  ;;  %3795 = vmatmul.mubr.msk.bf16.gmra.mrb[168].mxu1 %vm4906_vm7, %v5208_v18  ;;  %3814 = vmatprep.subr.bf16.mxu0 %v4010_v15 }
 0x2ac   : > { %v5577_v6 = vadd.f32 %v3412_v62, %v1613_v33  ;;  %v3415_v16 = vadd.f32 %v3414_v10, %v3413_v20  ;;  %3798 = vmatprep.mubr.msk.bf16.mxu1 %vm4906_vm7, %v5210_v11  ;;  %v1624_v2 = vadd.f32 %v3309_v4, %v5442_v14  ;;  %3815 = vmatpush3.bf16.msra.mxu0 %v4010_v15 }
 0x2ae   : > { %v5585_v1 = vadd.f32 %v3415_v16, %v1616_v41  ;;  %v3310_v44 = vpop.f32.mrb[64].mxu1 }
 0x2af   : > { %v3311_v51 = vpop.f32.mrb[65].mxu1 }
 0x2b0   : > { %v3416_v7 = vpop.f32.mrb[60].mxu0  ;;  %v3312_v32 = vadd.f32 %v3311_v51, %v3310_v44  ;;  %v3313_v46 = vpop.f32.mrb[66].mxu1 }
 0x2b1   : > { %v3417_v39 = vpop.f32.mrb[61].mxu0  ;;  %v3314_v57 = vpop.f32.mrb[67].mxu1 }
 0x2b2   : > { %v3418_v21 = vadd.f32 %v3417_v39, %v3416_v7  ;;  %v3419_v30 = vpop.f32.mrb[62].mxu0  ;;  %v3315_v18 = vadd.f32 %v3314_v57, %v3313_v46  ;;  %v1629_v25 = vadd.f32 %v3312_v32, %v5442_v14 }
 0x2b3   : > { %v3420_v58 = vpop.f32.mrb[63].mxu0  ;;  %3799 = vmatmul.mubr.bf16.gmra.mrb[172].mxu1 %v6036_v38 }
 0x2b4   : > { %v5589_v11 = vadd.f32 %v3418_v21, %v1621_v55  ;;  %v3421_v9 = vadd.f32 %v3420_v58, %v3419_v30  ;;  %v1632_v19 = vadd.f32 %v3315_v18, %v5442_v14 }
 0x2b6   : > { %v5592_v42 = vadd.f32 %v3421_v9, %v1624_v2  ;;  %v3316_v31 = vpop.f32.mrb[68].mxu1 }
 0x2b7   : > { %v3317_v60 = vpop.f32.mrb[69].mxu1 }
 0x2b8   : > { %v3422_v49 = vpop.f32.mrb[64].mxu0  ;;  %v3318_v56 = vadd.f32 %v3317_v60, %v3316_v31  ;;  %v3319_v8 = vpop.f32.mrb[70].mxu1 }
 0x2b9   : > { %v3423_v45 = vpop.f32.mrb[65].mxu0  ;;  %v3320_v61 = vpop.f32.mrb[71].mxu1 }
 0x2ba   : > { %v3424_v37 = vadd.f32 %v3423_v45, %v3422_v49  ;;  %v3425_v43 = vpop.f32.mrb[66].mxu0  ;;  %v3321_v36 = vadd.f32 %v3320_v61, %v3319_v8  ;;  %v1637_v41 = vadd.f32 %v3318_v56, %v5442_v14 }
 0x2bb   : > { %v3426_v17 = vpop.f32.mrb[67].mxu0 }
 0x2bc   : > { %v5596_v35 = vadd.f32 %v3424_v37, %v1629_v25  ;;  %v3427_v38 = vadd.f32 %v3426_v17, %v3425_v43  ;;  %v1640_v46 = vadd.f32 %v3321_v36, %v5442_v14  ;;  %v4011_v25 = vld [vmem:[#allocation7 + $0x38] sm:$0xff]  }
 0x2bd   : > { %3816 = vmatprep.subr.bf16.mxu0 %v4011_v25 }
 0x2be   : > { %v5598_v33 = vadd.f32 %v3427_v38, %v1632_v19  ;;  %v3322_v62 = vpop.f32.mrb[72].mxu1  ;;  %3817 = vmatpush3.bf16.msra.mxu0 %v4011_v25 }
 0x2bf   : > { %v3323_v0 = vpop.f32.mrb[73].mxu1 }
 0x2c0   : > { %v3428_v20 = vpop.f32.mrb[68].mxu0  ;;  %v3324_v4 = vadd.f32 %v3323_v0, %v3322_v62  ;;  %v3325_v10 = vpop.f32.mrb[74].mxu1 }
 0x2c1   : > { %v3429_v3 = vpop.f32.mrb[69].mxu0  ;;  %v3326_v44 = vpop.f32.mrb[75].mxu1 }
 0x2c2   : > { %v3430_v16 = vadd.f32 %v3429_v3, %v3428_v20  ;;  %v3431_v51 = vpop.f32.mrb[70].mxu0  ;;  %v3327_v7 = vadd.f32 %v3326_v44, %v3325_v10  ;;  %v1645_v31 = vadd.f32 %v3324_v4, %v5442_v14 }
 0x2c3   : > { %v3432_v32 = vpop.f32.mrb[71].mxu0 }
 0x2c4   : > { %v5602_v39 = vadd.f32 %v3430_v16, %v1637_v41  ;;  %v3433_v55 = vadd.f32 %v3432_v32, %v3431_v51  ;;  %v1648_v37 = vadd.f32 %v3327_v7, %v5442_v14 }
 0x2c6   : > { %v5604_v21 = vadd.f32 %v3433_v55, %v1640_v46  ;;  %v3328_v57 = vpop.f32.mrb[76].mxu1 }
 0x2c7   : > { %v3329_v30 = vpop.f32.mrb[77].mxu1 }
 0x2c8   : > { %v3434_v18 = vpop.f32.mrb[72].mxu0  ;;  %v3330_v58 = vadd.f32 %v3329_v30, %v3328_v57  ;;  %v3331_v2 = vpop.f32.mrb[78].mxu1 }
 0x2c9   : > { %v3435_v9 = vpop.f32.mrb[73].mxu0  ;;  %v3332_v49 = vpop.f32.mrb[79].mxu1 }
 0x2ca   : > { %v3436_v60 = vadd.f32 %v3435_v9, %v3434_v18  ;;  %v3437_v56 = vpop.f32.mrb[74].mxu0  ;;  %v3333_v8 = vadd.f32 %v3332_v49, %v3331_v2  ;;  %v1653_v20 = vadd.f32 %v3330_v58, %v5442_v14 }
 0x2cb   : > { %v3438_v45 = vpop.f32.mrb[75].mxu0 }
 0x2cc   : > { %v5608_v61 = vadd.f32 %v3436_v60, %v1645_v31  ;;  %v3439_v43 = vadd.f32 %v3438_v45, %v3437_v56  ;;  %v1656_v51 = vadd.f32 %v3333_v8, %v5442_v14 }
 0x2ce   : > { %v5610_v36 = vadd.f32 %v3439_v43, %v1648_v37  ;;  %v3462_v17 = vpop.f32.mrb[80].mxu1 }
 0x2cf   : > { %v3463_v19 = vpop.f32.mrb[81].mxu1 }
 0x2d0   : > { %v3440_v15 = vpop.f32.mrb[76].mxu0  ;;  %v3464_v38 = vadd.f32 %v3463_v19, %v3462_v17  ;;  %v3465_v0 = vpop.f32.mrb[82].mxu1 }
 0x2d1   : > { %v3441_v62 = vpop.f32.mrb[77].mxu0  ;;  %v3466_v3 = vpop.f32.mrb[83].mxu1 }
 0x2d2   : > { %v3442_v4 = vadd.f32 %v3441_v62, %v3440_v15  ;;  %v3443_v10 = vpop.f32.mrb[78].mxu0  ;;  %v1855_v41 = vadd.f32 %v3464_v38, %v5448_v52  ;;  %v3467_v16 = vadd.f32 %v3466_v3, %v3465_v0 }
 0x2d3   : > { %v3444_v44 = vpop.f32.mrb[79].mxu0 }
 0x2d4   : > { %v5615_v7 = vadd.f32 %v3442_v4, %v1653_v20  ;;  %v3445_v32 = vadd.f32 %v3444_v44, %v3443_v10  ;;  %v1858_v46 = vadd.f32 %v3467_v16, %v5457_v53 }
 0x2d6   : > { %v5618_v55 = vadd.f32 %v3445_v32, %v1656_v51  ;;  %v3468_v57 = vpop.f32.mrb[84].mxu1 }
 0x2d7   : > { %v3469_v30 = vpop.f32.mrb[85].mxu1 }
 0x2d8   : > { %v3574_v18 = vpop.f32.mrb[80].mxu0  ;;  %v3470_v58 = vadd.f32 %v3469_v30, %v3468_v57  ;;  %v3471_v2 = vpop.f32.mrb[86].mxu1 }
 0x2d9   : > { %v3575_v9 = vpop.f32.mrb[81].mxu0  ;;  %v3472_v60 = vpop.f32.mrb[87].mxu1 }
 0x2da   : > { %v3576_v31 = vadd.f32 %v3575_v9, %v3574_v18  ;;  %v3577_v52 = vpop.f32.mrb[82].mxu0  ;;  %v1863_v49 = vadd.f32 %v3470_v58, %v5462_v27  ;;  %v3473_v56 = vadd.f32 %v3472_v60, %v3471_v2 }
 0x2db   : > { %v3578_v14 = vpop.f32.mrb[83].mxu0 }
 0x2dc   : > { %v3579_v8 = vadd.f32 %v3578_v14, %v3577_v52  ;;  %v5621_v45 = vadd.f32 %v3576_v31, %v1855_v41  ;;  %v1866_v53 = vadd.f32 %v3473_v56, %v5471_v13 }
 0x2de   : > { %v5624_v25 = vadd.f32 %v3579_v8, %v1858_v46  ;;  %v3474_v37 = vpop.f32.mrb[88].mxu1 }
 0x2df   : > { %v3475_v43 = vpop.f32.mrb[89].mxu1 }
 0x2e0   : > { %v3580_v17 = vpop.f32.mrb[84].mxu0  ;;  %v3476_v15 = vadd.f32 %v3475_v43, %v3474_v37  ;;  %v3477_v19 = vpop.f32.mrb[90].mxu1 }
 0x2e1   : > { %v3581_v38 = vpop.f32.mrb[85].mxu0  ;;  %v3478_v0 = vpop.f32.mrb[91].mxu1 }
 0x2e2   : > { %v3582_v62 = vadd.f32 %v3581_v38, %v3580_v17  ;;  %v3583_v20 = vpop.f32.mrb[86].mxu0  ;;  %v1871_v27 = vadd.f32 %v3476_v15, %v5476_v24  ;;  %v3479_v4 = vadd.f32 %v3478_v0, %v3477_v19 }
 0x2e3   : > { %v3584_v10 = vpop.f32.mrb[87].mxu0 }
 0x2e4   : > { %v3585_v3 = vadd.f32 %v3584_v10, %v3583_v20  ;;  %v5627_v41 = vadd.f32 %v3582_v62, %v1863_v49  ;;  %v1874_v13 = vadd.f32 %v3479_v4, %v5485_v63 }
 0x2e6   : > { %v5630_v16 = vadd.f32 %v3585_v3, %v1866_v53  ;;  %v3480_v44 = vpop.f32.mrb[92].mxu1 }
 0x2e7   : > { %v3481_v51 = vpop.f32.mrb[93].mxu1 }
 0x2e8   : > { %v3586_v32 = vpop.f32.mrb[88].mxu0  ;;  %v3482_v46 = vadd.f32 %v3481_v51, %v3480_v44  ;;  %v3483_v57 = vpop.f32.mrb[94].mxu1 }
 0x2e9   : > { %v3587_v30 = vpop.f32.mrb[89].mxu0  ;;  %v3484_v58 = vpop.f32.mrb[95].mxu1 }
 0x2ea   : > { %v3588_v18 = vadd.f32 %v3587_v30, %v3586_v32  ;;  %v3589_v2 = vpop.f32.mrb[90].mxu0  ;;  %v1879_v24 = vadd.f32 %v3482_v46, %v5490_v59  ;;  %v3485_v9 = vadd.f32 %v3484_v58, %v3483_v57 }
 0x2eb   : > { %v3590_v31 = vpop.f32.mrb[91].mxu0 }
 0x2ec   : > { %v3591_v60 = vadd.f32 %v3590_v31, %v3589_v2  ;;  %v5633_v52 = vadd.f32 %v3588_v18, %v1871_v27  ;;  %v1882_v63 = vadd.f32 %v3485_v9, %v5499_v22 }
 0x2ee   : > { %v5636_v49 = vadd.f32 %v3591_v60, %v1874_v13  ;;  %v3486_v56 = vpop.f32.mrb[96].mxu1 }
 0x2ef   : > { %v3487_v14 = vpop.f32.mrb[97].mxu1 }
 0x2f0   : > { %v3592_v8 = vpop.f32.mrb[92].mxu0  ;;  %v3488_v53 = vadd.f32 %v3487_v14, %v3486_v56  ;;  %v3489_v37 = vpop.f32.mrb[98].mxu1 }
 0x2f1   : > { %v3593_v43 = vpop.f32.mrb[93].mxu0  ;;  %v3490_v15 = vpop.f32.mrb[99].mxu1 }
 0x2f2   : > { %v3594_v17 = vadd.f32 %v3593_v43, %v3592_v8  ;;  %v3595_v19 = vpop.f32.mrb[94].mxu0  ;;  %v1887_v59 = vadd.f32 %v3488_v53, %v5504_v54  ;;  %v3491_v38 = vadd.f32 %v3490_v15, %v3489_v37 }
 0x2f3   : > { %v3596_v62 = vpop.f32.mrb[95].mxu0 }
 0x2f4   : > { %v3597_v0 = vadd.f32 %v3596_v62, %v3595_v19  ;;  %v5639_v20 = vadd.f32 %v3594_v17, %v1879_v24  ;;  %v1890_v22 = vadd.f32 %v3491_v38, %v5513_v28 }
 0x2f6   : > { %v5642_v27 = vadd.f32 %v3597_v0, %v1882_v63  ;;  %v3492_v4 = vpop.f32.mrb[100].mxu1 }
 0x2f7   : > { %v3493_v10 = vpop.f32.mrb[101].mxu1 }
 0x2f8   : > { %v3598_v3 = vpop.f32.mrb[96].mxu0  ;;  %v3494_v13 = vadd.f32 %v3493_v10, %v3492_v4  ;;  %v3495_v44 = vpop.f32.mrb[102].mxu1 }
 0x2f9   : > { %v3599_v51 = vpop.f32.mrb[97].mxu0  ;;  %v3496_v46 = vpop.f32.mrb[103].mxu1 }
 0x2fa   : > { %v3600_v32 = vadd.f32 %v3599_v51, %v3598_v3  ;;  %v3601_v57 = vpop.f32.mrb[98].mxu0  ;;  %v1895_v54 = vadd.f32 %v3494_v13, %v5517_v5  ;;  %v3497_v30 = vadd.f32 %v3496_v46, %v3495_v44 }
 0x2fb   : > { %v3602_v18 = vpop.f32.mrb[99].mxu0 }
 0x2fc   : > { %v3603_v58 = vadd.f32 %v3602_v18, %v3601_v57  ;;  %v5645_v2 = vadd.f32 %v3600_v32, %v1887_v59  ;;  %v1898_v28 = vadd.f32 %v3497_v30, %v5525_v29 }
 0x2fe   : > { %v5648_v24 = vadd.f32 %v3603_v58, %v1890_v22  ;;  %v3498_v9 = vpop.f32.mrb[104].mxu1 }
 0x2ff   : > { %v3499_v31 = vpop.f32.mrb[105].mxu1 }
 0x300   : > { %v3604_v60 = vpop.f32.mrb[100].mxu0  ;;  %v3500_v63 = vadd.f32 %v3499_v31, %v3498_v9  ;;  %v3501_v56 = vpop.f32.mrb[106].mxu1 }
 0x301   : > { %v3605_v14 = vpop.f32.mrb[101].mxu0  ;;  %v3502_v53 = vpop.f32.mrb[107].mxu1 }
 0x302   : > { %v3606_v8 = vadd.f32 %v3605_v14, %v3604_v60  ;;  %v3607_v37 = vpop.f32.mrb[102].mxu0  ;;  %v1903_v5 = vadd.f32 %v3500_v63, %v5529_v47  ;;  %v3503_v43 = vadd.f32 %v3502_v53, %v3501_v56 }
 0x303   : > { %v3608_v17 = vpop.f32.mrb[103].mxu0 }
 0x304   : > { %v3609_v15 = vadd.f32 %v3608_v17, %v3607_v37  ;;  %v5651_v19 = vadd.f32 %v3606_v8, %v1895_v54  ;;  %v1906_v29 = vadd.f32 %v3503_v43, %v5537_v23 }
 0x306   : > { %v5654_v59 = vadd.f32 %v3609_v15, %v1898_v28  ;;  %v3504_v38 = vpop.f32.mrb[108].mxu1 }
 0x307   : > { %v3505_v62 = vpop.f32.mrb[109].mxu1 }
 0x308   : > { %v3610_v0 = vpop.f32.mrb[104].mxu0  ;;  %v3506_v22 = vadd.f32 %v3505_v62, %v3504_v38  ;;  %v3507_v4 = vpop.f32.mrb[110].mxu1 }
 0x309   : > { %v3611_v10 = vpop.f32.mrb[105].mxu0  ;;  %v3508_v13 = vpop.f32.mrb[111].mxu1 }
 0x30a   : > { %v3612_v3 = vadd.f32 %v3611_v10, %v3610_v0  ;;  %v3613_v44 = vpop.f32.mrb[106].mxu0  ;;  %v1911_v47 = vadd.f32 %v3506_v22, %v5541_v26  ;;  %v3509_v51 = vadd.f32 %v3508_v13, %v3507_v4 }
 0x30b   : > { %v3614_v32 = vpop.f32.mrb[107].mxu0 }
 0x30c   : > { %v3615_v46 = vadd.f32 %v3614_v32, %v3613_v44  ;;  %v5657_v57 = vadd.f32 %v3612_v3, %v1903_v5  ;;  %v1914_v23 = vadd.f32 %v3509_v51, %v5549_v50 }
 0x30e   : > { %v5660_v54 = vadd.f32 %v3615_v46, %v1906_v29  ;;  %v3510_v30 = vpop.f32.mrb[112].mxu1 }
 0x30f   : > { %v3511_v18 = vpop.f32.mrb[113].mxu1 }
 0x310   : > { %v3616_v58 = vpop.f32.mrb[108].mxu0  ;;  %v3512_v28 = vadd.f32 %v3511_v18, %v3510_v30  ;;  %v3513_v9 = vpop.f32.mrb[114].mxu1 }
 0x311   : > { %v3617_v31 = vpop.f32.mrb[109].mxu0  ;;  %v3514_v63 = vpop.f32.mrb[115].mxu1 }
 0x312   : > { %v3618_v60 = vadd.f32 %v3617_v31, %v3616_v58  ;;  %v3619_v56 = vpop.f32.mrb[110].mxu0  ;;  %v1919_v26 = vadd.f32 %v3512_v28, %v5553_v48  ;;  %v3515_v14 = vadd.f32 %v3514_v63, %v3513_v9 }
 0x313   : > { %v3620_v8 = vpop.f32.mrb[111].mxu0 }
 0x314   : > { %v3621_v53 = vadd.f32 %v3620_v8, %v3619_v56  ;;  %v5663_v37 = vadd.f32 %v3618_v60, %v1911_v47  ;;  %v1922_v50 = vadd.f32 %v3515_v14, %v5561_v12 }
 0x316   : > { %v5666_v5 = vadd.f32 %v3621_v53, %v1914_v23  ;;  %v3516_v43 = vpop.f32.mrb[116].mxu1 }
 0x317   : > { %v3517_v17 = vpop.f32.mrb[117].mxu1 }
 0x318   : > { %v3622_v15 = vpop.f32.mrb[112].mxu0  ;;  %v3518_v29 = vadd.f32 %v3517_v17, %v3516_v43  ;;  %v3519_v38 = vpop.f32.mrb[118].mxu1 }
 0x319   : > { %v3623_v62 = vpop.f32.mrb[113].mxu0  ;;  %v3520_v22 = vpop.f32.mrb[119].mxu1 }
 0x31a   : > { %v3624_v0 = vadd.f32 %v3623_v62, %v3622_v15  ;;  %v3625_v4 = vpop.f32.mrb[114].mxu0  ;;  %v1927_v48 = vadd.f32 %v3518_v29, %v5565_v40  ;;  %v3521_v10 = vadd.f32 %v3520_v22, %v3519_v38 }
 0x31b   : > { %v3626_v3 = vpop.f32.mrb[115].mxu0 }
 0x31c   : > { %v3627_v13 = vadd.f32 %v3626_v3, %v3625_v4  ;;  %v5669_v44 = vadd.f32 %v3624_v0, %v1919_v26  ;;  %v1930_v12 = vadd.f32 %v3521_v10, %v5573_v34 }
 0x31e   : > { %v5672_v47 = vadd.f32 %v3627_v13, %v1922_v50  ;;  %v3522_v51 = vpop.f32.mrb[120].mxu1 }
 0x31f   : > { %v3523_v32 = vpop.f32.mrb[121].mxu1 }
 0x320   : > { %v3628_v46 = vpop.f32.mrb[116].mxu0  ;;  %v3524_v23 = vadd.f32 %v3523_v32, %v3522_v51  ;;  %v3525_v30 = vpop.f32.mrb[122].mxu1 }
 0x321   : > { %v3629_v18 = vpop.f32.mrb[117].mxu0  ;;  %v3526_v28 = vpop.f32.mrb[123].mxu1 }
 0x322   : > { %v3630_v58 = vadd.f32 %v3629_v18, %v3628_v46  ;;  %v3631_v9 = vpop.f32.mrb[118].mxu0  ;;  %v1935_v40 = vadd.f32 %v3524_v23, %v5577_v6  ;;  %v3527_v31 = vadd.f32 %v3526_v28, %v3525_v30 }
 0x323   : > { %v3632_v60 = vpop.f32.mrb[119].mxu0 }
 0x324   : > { %v3633_v63 = vadd.f32 %v3632_v60, %v3631_v9  ;;  %v5675_v56 = vadd.f32 %v3630_v58, %v1927_v48  ;;  %v1938_v34 = vadd.f32 %v3527_v31, %v5585_v1 }
 0x326   : > { %v5678_v26 = vadd.f32 %v3633_v63, %v1930_v12  ;;  %v3528_v14 = vpop.f32.mrb[124].mxu1 }
 0x327   : > { %v3529_v8 = vpop.f32.mrb[125].mxu1 }
 0x328   : > { %v3634_v53 = vpop.f32.mrb[120].mxu0  ;;  %v3530_v50 = vadd.f32 %v3529_v8, %v3528_v14  ;;  %v3531_v43 = vpop.f32.mrb[126].mxu1 }
 0x329   : > { %v3635_v17 = vpop.f32.mrb[121].mxu0  ;;  %v3532_v29 = vpop.f32.mrb[127].mxu1 }
 0x32a   : > { %v3636_v15 = vadd.f32 %v3635_v17, %v3634_v53  ;;  %v3637_v38 = vpop.f32.mrb[122].mxu0  ;;  %v1943_v6 = vadd.f32 %v3530_v50, %v5589_v11  ;;  %v3533_v62 = vadd.f32 %v3532_v29, %v3531_v43 }
 0x32b   : > { %v3638_v0 = vpop.f32.mrb[123].mxu0 }
 0x32c   : > { %v3639_v22 = vadd.f32 %v3638_v0, %v3637_v38  ;;  %v5681_v4 = vadd.f32 %v3636_v15, %v1935_v40  ;;  %v1946_v1 = vadd.f32 %v3533_v62, %v5592_v42 }
 0x32e   : > { %v5684_v48 = vadd.f32 %v3639_v22, %v1938_v34  ;;  %v3534_v10 = vpop.f32.mrb[128].mxu1 }
 0x32f   : > { %v3535_v3 = vpop.f32.mrb[129].mxu1 }
 0x330   : > { %v3640_v13 = vpop.f32.mrb[124].mxu0  ;;  %v3536_v12 = vadd.f32 %v3535_v3, %v3534_v10  ;;  %v3537_v51 = vpop.f32.mrb[130].mxu1 }
 0x331   : > { %v3641_v32 = vpop.f32.mrb[125].mxu0  ;;  %v3538_v23 = vpop.f32.mrb[131].mxu1 }
 0x332   : > { %v3642_v46 = vadd.f32 %v3641_v32, %v3640_v13  ;;  %v3643_v30 = vpop.f32.mrb[126].mxu0  ;;  %v1951_v11 = vadd.f32 %v3536_v12, %v5596_v35  ;;  %v3539_v18 = vadd.f32 %v3538_v23, %v3537_v51 }
 0x333   : > { %v3644_v58 = vpop.f32.mrb[127].mxu0 }
 0x334   : > { %v3645_v28 = vadd.f32 %v3644_v58, %v3643_v30  ;;  %v5687_v9 = vadd.f32 %v3642_v46, %v1943_v6  ;;  %v1954_v42 = vadd.f32 %v3539_v18, %v5598_v33 }
 0x336   : > { %v5690_v40 = vadd.f32 %v3645_v28, %v1946_v1  ;;  %v3540_v31 = vpop.f32.mrb[132].mxu1 }
 0x337   : > { %v3541_v60 = vpop.f32.mrb[133].mxu1 }
 0x338   : > { %v3646_v63 = vpop.f32.mrb[128].mxu0  ;;  %v3542_v34 = vadd.f32 %v3541_v60, %v3540_v31  ;;  %v3543_v14 = vpop.f32.mrb[134].mxu1 }
 0x339   : > { %v3647_v8 = vpop.f32.mrb[129].mxu0  ;;  %v3544_v50 = vpop.f32.mrb[135].mxu1 }
 0x33a   : > { %v3648_v53 = vadd.f32 %v3647_v8, %v3646_v63  ;;  %v3649_v43 = vpop.f32.mrb[130].mxu0  ;;  %v1959_v35 = vadd.f32 %v3542_v34, %v5602_v39  ;;  %v3545_v17 = vadd.f32 %v3544_v50, %v3543_v14 }
 0x33b   : > { %v3650_v15 = vpop.f32.mrb[131].mxu0 }
 0x33c   : > { %v3651_v29 = vadd.f32 %v3650_v15, %v3649_v43  ;;  %v5693_v38 = vadd.f32 %v3648_v53, %v1951_v11  ;;  %v1962_v33 = vadd.f32 %v3545_v17, %v5604_v21 }
 0x33e   : > { %v5696_v6 = vadd.f32 %v3651_v29, %v1954_v42  ;;  %v3546_v62 = vpop.f32.mrb[136].mxu1 }
 0x33f   : > { %v3547_v0 = vpop.f32.mrb[137].mxu1 }
 0x340   : > { %v3652_v22 = vpop.f32.mrb[132].mxu0  ;;  %v3548_v1 = vadd.f32 %v3547_v0, %v3546_v62  ;;  %v3549_v10 = vpop.f32.mrb[138].mxu1 }
 0x341   : > { %v3653_v3 = vpop.f32.mrb[133].mxu0  ;;  %v3550_v12 = vpop.f32.mrb[139].mxu1 }
 0x342   : > { %v3654_v13 = vadd.f32 %v3653_v3, %v3652_v22  ;;  %v3655_v51 = vpop.f32.mrb[134].mxu0  ;;  %v1967_v39 = vadd.f32 %v3548_v1, %v5608_v61  ;;  %v3551_v32 = vadd.f32 %v3550_v12, %v3549_v10 }
 0x343   : > { %v3656_v46 = vpop.f32.mrb[135].mxu0 }
 0x344   : > { %v3657_v23 = vadd.f32 %v3656_v46, %v3655_v51  ;;  %v5699_v30 = vadd.f32 %v3654_v13, %v1959_v35  ;;  %v1970_v21 = vadd.f32 %v3551_v32, %v5610_v36 }
 0x346   : > { %v5702_v11 = vadd.f32 %v3657_v23, %v1962_v33  ;;  %v3552_v18 = vpop.f32.mrb[140].mxu1 }
 0x347   : > { %v3553_v58 = vpop.f32.mrb[141].mxu1 }
 0x348   : > { %v3658_v28 = vpop.f32.mrb[136].mxu0  ;;  %v3554_v42 = vadd.f32 %v3553_v58, %v3552_v18  ;;  %v3555_v31 = vpop.f32.mrb[142].mxu1 }
 0x349   : > { %v3659_v60 = vpop.f32.mrb[137].mxu0  ;;  %v3556_v34 = vpop.f32.mrb[143].mxu1 }
 0x34a   : > { %v3660_v63 = vadd.f32 %v3659_v60, %v3658_v28  ;;  %v3661_v14 = vpop.f32.mrb[138].mxu0  ;;  %v1975_v61 = vadd.f32 %v3554_v42, %v5615_v7  ;;  %v3557_v8 = vadd.f32 %v3556_v34, %v3555_v31 }
 0x34b   : > { %v3662_v53 = vpop.f32.mrb[139].mxu0 }
 0x34c   : > { %v3663_v50 = vadd.f32 %v3662_v53, %v3661_v14  ;;  %v5705_v43 = vadd.f32 %v3660_v63, %v1967_v39  ;;  %v1978_v36 = vadd.f32 %v3557_v8, %v5618_v55 }
 0x34e   : > { %v5708_v35 = vadd.f32 %v3663_v50, %v1970_v21  ;;  %v3772_v17 = vpop.f32.mrb[144].mxu1 }
 0x34f   : > { %v2185_v15 = vadd.f32 %v3772_v17, %v5627_v41  ;;  %v2176_v33 = vpop.f32.mrb[145].mxu1 }
 0x350   : > { %v3664_v29 = vpop.f32.mrb[140].mxu0  ;;  %v2177_v62 = vadd.f32 %v2176_v33, %v5621_v45  ;;  %v3773_v22 = vpop.f32.mrb[146].mxu1 }
 0x351   : > { %v3665_v0 = vpop.f32.mrb[141].mxu0  ;;  %v2188_v7 = vadd.f32 %v3773_v22, %v5630_v16  ;;  %v2179_v3 = vpop.f32.mrb[147].mxu1  ;;  %v2305_v55 = vmax.f32 %v2185_v15, 0.0 }
 0x352   : > { %v3666_v1 = vadd.f32 %v3665_v0, %v3664_v29  ;;  %v3667_v10 = vpop.f32.mrb[142].mxu0  ;;  %v2180_v13 = vadd.f32 %v2179_v3, %v5624_v25  ;;  %v2303_v41 = vmax.f32 %v2177_v62, 0.0 }
 0x353   : > { %v3668_v12 = vpop.f32.mrb[143].mxu0  ;;  %v2306_v51 = vmax.f32 %v2188_v7, 0.0 }
 0x354   : > { %v3669_v39 = vadd.f32 %v3668_v12, %v3667_v10  ;;  %v5714_v32 = vadd.f32 %v3666_v1, %v1975_v61  ;;  %v2304_v46 = vmax.f32 %v2180_v13, 0.0 }
 0x355   : > { %v2336_v23 = vpack.c.bf16 %v2306_v51, %v2305_v55 }
 0x356   : > { %v5716_v21 = vadd.f32 %v3669_v39, %v1978_v36  ;;  %v2335_v45 = vpack.c.bf16 %v2304_v46, %v2303_v41  ;;  %v3776_v18 = vpop.f32.mrb[148].mxu1 }
 0x357   : > { %v2201_v58 = vadd.f32 %v3776_v18, %v5639_v20  ;;  %v2192_v16 = vpop.f32.mrb[149].mxu1 }
 0x358   : > { %v2193_v28 = vadd.f32 %v2192_v16, %v5633_v52  ;;  %v3777_v42 = vpop.f32.mrb[150].mxu1  ;;  %3818 = vmatprep.mubr.bf16.mxu0 %v2335_v45 }
 0x359   : > { %v2204_v25 = vadd.f32 %v3777_v42, %v5642_v27  ;;  %v2195_v31 = vpop.f32.mrb[151].mxu1  ;;  %3819 = vmatmul.mubr.bf16.vlgmr.msra.gmra.mrb[144].mxu0 %v2336_v23  ;;  %v2309_v63 = vmax.f32 %v2201_v58, 0.0 }
 0x35a   : > { %v2196_v60 = vadd.f32 %v2195_v31, %v5636_v49  ;;  %v2307_v14 = vmax.f32 %v2193_v28, 0.0 }
 0x35b   : > { %v2310_v34 = vmax.f32 %v2204_v25, 0.0 }
 0x35c   : > { %v2308_v61 = vmax.f32 %v2196_v60, 0.0 }
 0x35d   : > { %v2338_v8 = vpack.c.bf16 %v2310_v34, %v2309_v63 }
 0x35e   : > { %v2337_v53 = vpack.c.bf16 %v2308_v61, %v2307_v14  ;;  %v3780_v50 = vpop.f32.mrb[152].mxu1 }
 0x35f   : > { %v2217_v20 = vadd.f32 %v3780_v50, %v5651_v19  ;;  %v2208_v36 = vpop.f32.mrb[153].mxu1 }
 0x360   : > { %v2209_v52 = vadd.f32 %v2208_v36, %v5645_v2  ;;  %v3781_v17 = vpop.f32.mrb[154].mxu1  ;;  %3822 = vmatprep.mubr.bf16.mxu0 %v2337_v53 }
 0x361   : > { %v2220_v27 = vadd.f32 %v3781_v17, %v5654_v59  ;;  %v2211_v15 = vpop.f32.mrb[155].mxu1  ;;  %3823 = vmatmul.mubr.bf16.gmra.mrb[148].mxu0 %v2338_v8  ;;  %v2313_v29 = vmax.f32 %v2217_v20, 0.0 }
 0x362   : > { %v2212_v49 = vadd.f32 %v2211_v15, %v5648_v24  ;;  %v2311_v62 = vmax.f32 %v2209_v52, 0.0 }
 0x363   : > { %v2314_v33 = vmax.f32 %v2220_v27, 0.0 }
 0x364   : > { %v2312_v0 = vmax.f32 %v2212_v49, 0.0 }
 0x365   : > { %v2340_v22 = vpack.c.bf16 %v2314_v33, %v2313_v29 }
 0x366   : > { %v2339_v1 = vpack.c.bf16 %v2312_v0, %v2311_v62  ;;  %v3784_v7 = vpop.f32.mrb[156].mxu1 }
 0x367   : > { %v2233_v19 = vadd.f32 %v3784_v7, %v5663_v37  ;;  %v2224_v10 = vpop.f32.mrb[157].mxu1 }
 0x368   : > { %v2225_v2 = vadd.f32 %v2224_v10, %v5657_v57  ;;  %v3785_v3 = vpop.f32.mrb[158].mxu1  ;;  %3826 = vmatprep.mubr.bf16.mxu0 %v2339_v1 }
 0x369   : > { %v2236_v59 = vadd.f32 %v3785_v3, %v5666_v5  ;;  %v2227_v13 = vpop.f32.mrb[159].mxu1  ;;  %3827 = vmatmul.mubr.bf16.gmra.mrb[152].mxu0 %v2340_v22  ;;  %v2317_v12 = vmax.f32 %v2233_v19, 0.0 }
 0x36a   : > { %v2228_v24 = vadd.f32 %v2227_v13, %v5660_v54  ;;  %v2315_v51 = vmax.f32 %v2225_v2, 0.0 }
 0x36b   : > { %v2318_v55 = vmax.f32 %v2236_v59, 0.0 }
 0x36c   : > { %v2316_v39 = vmax.f32 %v2228_v24, 0.0 }
 0x36d   : > { %v2342_v41 = vpack.c.bf16 %v2318_v55, %v2317_v12 }
 0x36e   : > { %v2341_v46 = vpack.c.bf16 %v2316_v39, %v2315_v51  ;;  %v3788_v23 = vpop.f32.mrb[160].mxu1  ;;  %v4013_v39 = vld [vmem:[%s4438_s9] sm:$0xff] }
 0x36f   : > { %v2249_v37 = vadd.f32 %v3788_v23, %v5675_v56  ;;  %v2240_v45 = vpop.f32.mrb[161].mxu1 }
 0x370   : > { %v2241_v57 = vadd.f32 %v2240_v45, %v5669_v44  ;;  %v3789_v18 = vpop.f32.mrb[162].mxu1  ;;  %3830 = vmatprep.mubr.bf16.mxu0 %v2341_v46 }
 0x371   : > { %v2252_v5 = vadd.f32 %v3789_v18, %v5678_v26  ;;  %v2243_v58 = vpop.f32.mrb[163].mxu1  ;;  %3831 = vmatmul.mubr.bf16.gmra.mrb[156].mxu0 %v2342_v41  ;;  %v2321_v16 = vmax.f32 %v2249_v37, 0.0  ;;  %v2367_v41 = vsel %vm415_vm0, %v4013_v39, 0.0  ;;  %v4014_v37 = vld [vmem:[%s4438_s9 + $0x18] sm:$0xff] }
 0x372   : > { %v2244_v54 = vadd.f32 %v2243_v58, %v5672_v47  ;;  %v2319_v42 = vmax.f32 %v2241_v57, 0.0  ;;  %v2370_v45 = vsel %vm415_vm0, %v4014_v37, 0.0  ;;  %v4015_v58 = vld [vmem:[%s4438_s9 + $0x8] sm:$0xff] }
 0x373   : > { %v2322_v28 = vmax.f32 %v2252_v5, 0.0 }
 0x374   : > { %v2320_v25 = vmax.f32 %v2244_v54, 0.0  ;;  %v2368_v54 = vsel %vm415_vm0, %v4015_v58, 0.0  ;;  %v4025_v58 = vld [vmem:[%s4438_s9 + $0x60] sm:$0xff] }
 0x375   : > { %v2344_v31 = vpack.c.bf16 %v2322_v28, %v2321_v16 }
 0x376   : > { %v2343_v60 = vpack.c.bf16 %v2320_v25, %v2319_v42  ;;  %v3792_v63 = vpop.f32.mrb[164].mxu1 }
 0x377   : > { %v2265_v56 = vadd.f32 %v3792_v63, %v5687_v9  ;;  %v2256_v34 = vpop.f32.mrb[165].mxu1 }
 0x378   : > { %v2257_v44 = vadd.f32 %v2256_v34, %v5681_v4  ;;  %v3793_v14 = vpop.f32.mrb[166].mxu1  ;;  %3834 = vmatprep.mubr.bf16.mxu0 %v2343_v60 }
 0x379   : > { %v2268_v26 = vadd.f32 %v3793_v14, %v5690_v40  ;;  %v2259_v61 = vpop.f32.mrb[167].mxu1  ;;  %3835 = vmatmul.mubr.bf16.gmra.mrb[160].mxu0 %v2344_v31  ;;  %v2325_v8 = vmax.f32 %v2265_v56, 0.0 }
 0x37a   : > { %v2260_v47 = vadd.f32 %v2259_v61, %v5684_v48  ;;  %v2323_v50 = vmax.f32 %v2257_v44, 0.0  ;;  %v4016_v44 = vld [vmem:[%s4438_s9 + $0x30] sm:$0xff] }
 0x37b   : > { %v2326_v53 = vmax.f32 %v2268_v26, 0.0  ;;  %v2373_v14 = vsel %vm415_vm0, %v4016_v44, 0.0 }
 0x37c   : > { %v2324_v20 = vmax.f32 %v2260_v47, 0.0  ;;  %v4017_v47 = vld [vmem:[%s4438_s9 + $0x20] sm:$0xff] }
 0x37d   : > { %v2346_v36 = vpack.c.bf16 %v2326_v53, %v2325_v8  ;;  %v2371_v8 = vsel %vm415_vm0, %v4017_v47, 0.0 }
 0x37e   : > { %v2345_v52 = vpack.c.bf16 %v2324_v20, %v2323_v50  ;;  %v3796_v17 = vpop.f32.mrb[168].mxu1  ;;  %v4018_v20 = vld [vmem:[%s4438_s9 + $0x38] sm:$0xff] }
 0x37f   : > { %v2281_v9 = vadd.f32 %v3796_v17, %v5699_v30  ;;  %v2272_v27 = vpop.f32.mrb[169].mxu1 }
 0x380   : > { %v2273_v4 = vadd.f32 %v2272_v27, %v5693_v38  ;;  %v3797_v15 = vpop.f32.mrb[170].mxu1  ;;  %3838 = vmatprep.mubr.bf16.mxu0 %v2345_v52  ;;  %v4019_v27 = vld [vmem:[%s4438_s9 + $0x28] sm:$0xff] }
 0x381   : > { %v2284_v40 = vadd.f32 %v3797_v15, %v5702_v11  ;;  %v2275_v49 = vpop.f32.mrb[171].mxu1  ;;  %3839 = vmatmul.mubr.bf16.gmra.mrb[164].mxu0 %v2346_v36  ;;  %v2329_v29 = vmax.f32 %v2281_v9, 0.0  ;;  %v2374_v36 = vsel %vm415_vm0, %v4018_v20, 0.0 }
 0x382   : > { %v2276_v48 = vadd.f32 %v2275_v49, %v5696_v6  ;;  %v2327_v62 = vmax.f32 %v2273_v4, 0.0  ;;  %v2372_v4 = vsel %vm415_vm0, %v4019_v27, 0.0  ;;  %v4029_v27 = vld [vmem:[%s4438_s9 + $0x80] sm:$0xff] }
 0x383   : > { %v2330_v33 = vmax.f32 %v2284_v40, 0.0 }
 0x384   : > { %v2328_v0 = vmax.f32 %v2276_v48, 0.0 }
 0x385   : > { %v2348_v22 = vpack.c.bf16 %v2330_v33, %v2329_v29 }
 0x386   : > { %v2347_v1 = vpack.c.bf16 %v2328_v0, %v2327_v62  ;;  %v3800_v7 = vpop.f32.mrb[172].mxu1 }
 0x387   : > { %v2297_v30 = vadd.f32 %v3800_v7, %v5714_v32  ;;  %v2288_v19 = vpop.f32.mrb[173].mxu1 }
 0x388   : > { %v2289_v38 = vadd.f32 %v2288_v19, %v5705_v43  ;;  %v3801_v10 = vpop.f32.mrb[174].mxu1  ;;  %3842 = vmatprep.mubr.bf16.mxu0 %v2347_v1  ;;  %v5751_v43 = vld [vmem:[%s5905_s6] ss:$0 sm:$0xff]  ;;  %v4020_v1 = vld [vmem:[%s4438_s9 + $0x50] sm:$0xff] }
 0x389   : > { %v2300_v11 = vadd.f32 %v3801_v10, %v5716_v21  ;;  %v2291_v6 = vpop.f32.mrb[175].mxu1  ;;  %3843 = vmatmul.mubr.bf16.gmra.mrb[168].mxu0 %v2348_v22  ;;  %v2333_v3 = vmax.f32 %v2297_v30, 0.0  ;;  %v4012_v21 = vld [vmem:[%s4438_s9 + $0x10] sm:$0xff]  ;;  %v2377_v7 = vsel %vm415_vm0, %v4020_v1, 0.0 }
 0x38a   : > { %v2292_v2 = vadd.f32 %v2291_v6, %v5708_v35  ;;  %v2331_v13 = vmax.f32 %v2289_v38, 0.0  ;;  %v2369_v35 = vsel %vm415_vm0, %v4012_v21, 0.0  ;;  %v4021_v38 = vld [vmem:[%s4438_s9 + $0x40] sm:$0xff] }
 0x38b   : > { %v2334_v59 = vmax.f32 %v2300_v11, 0.0  ;;  %v2375_v10 = vsel %vm415_vm0, %v4021_v38, 0.0 }
 0x38c   : > { %v2332_v24 = vmax.f32 %v2292_v2, 0.0  ;;  %v4022_v2 = vld [vmem:[%s4438_s9 + $0x58] sm:$0xff] }
 0x38d   : > { %v2350_v32 = vpack.c.bf16 %v2334_v59, %v2333_v3  ;;  %v2378_v3 = vsel %vm415_vm0, %v4022_v2, 0.0 }
 0x38e   : > { %v2349_v12 = vpack.c.bf16 %v2332_v24, %v2331_v13 }
 0x390   : > { %3846 = vmatprep.mubr.bf16.mxu0 %v2349_v12 }
 0x391   : > { %3847 = vmatmul.mubr.bf16.gmra.mrb[172].mxu0 %v2350_v32  ;;  %v4023_v32 = vld [vmem:[%s4438_s9 + $0x48] sm:$0xff] }
 0x392   : > { %v2376_v12 = vsel %vm415_vm0, %v4023_v32, 0.0  ;;  %v4033_v32 = vld [vmem:[%s4438_s9 + $0xa0] sm:$0xff] }
 0x42c   : > { %v3820_v55 = vpop.f32.mrb[144].mxu0 }
 0x42d   : > { %v2497_v51 = vadd.f32 %v3820_v55, %v5751_v43  ;;  %v2488_v46 = vpop.f32.mrb[145].mxu0 }
 0x42e   : > { %v2489_v23 = vadd.f32 %v5751_v43, %v2488_v46  ;;  %v3821_v57 = vpop.f32.mrb[146].mxu0 }
 0x42f   : > { %v2617_v18 = vadd.f32 %v2497_v51, %v2369_v35  ;;  %v2500_v5 = vadd.f32 %v3821_v57, %v5751_v43  ;;  %v2491_v16 = vpop.f32.mrb[147].mxu0 }
 0x430   : > { %v2615_v28 = vadd.f32 %v2489_v23, %v2367_v41  ;;  %v2492_v42 = vadd.f32 %v5751_v43, %v2491_v16 }
 0x431   : > { %v2649_v25 = vmax.f32 %v2617_v18, 0.0  ;;  %v2618_v31 = vadd.f32 %v2500_v5, %v2370_v45  ;;  %v4024_v45 = vld [vmem:[%s4438_s9 + $0x70] sm:$0xff] }
 0x432   : > { %v2647_v60 = vmax.f32 %v2615_v28, 0.0  ;;  %v2616_v63 = vadd.f32 %v2492_v42, %v2368_v54  ;;  %v2381_v57 = vsel %vm415_vm0, %v4024_v45, 0.0  ;;  %v2379_v54 = vsel %vm415_vm0, %v4025_v58, 0.0  ;;  %v4026_v42 = vld [vmem:[%s4438_s9 + $0x78] sm:$0xff] }
 0x433   : > { %2681 = vst [vmem:[%s5767_s13 + $0x10] sm:$0xff] %v2649_v25  ;;  %v2650_v56 = vmax.f32 %v2618_v31, 0.0  ;;  %v2382_v25 = vsel %vm415_vm0, %v4026_v42, 0.0 }
 0x434   : > { %2679 = vst [vmem:[%s5767_s13] sm:$0xff] %v2647_v60  ;;  %v2648_v34 = vmax.f32 %v2616_v63, 0.0  ;;  %v3824_v26 = vpop.f32.mrb[148].mxu0 }
 0x435   : > { %2682 = vst [vmem:[%s5767_s13 + $0x18] sm:$0xff] %v2650_v56  ;;  %v2513_v61 = vadd.f32 %v3824_v26, %v5751_v43  ;;  %v2504_v53 = vpop.f32.mrb[149].mxu0  ;;  %v4027_v56 = vld [vmem:[%s4438_s9 + $0x68] sm:$0xff] }
 0x436   : > { %2680 = vst [vmem:[%s5767_s13 + $0x8] sm:$0xff] %v2648_v34  ;;  %v2505_v50 = vadd.f32 %v5751_v43, %v2504_v53  ;;  %v3825_v52 = vpop.f32.mrb[150].mxu0  ;;  %v2380_v34 = vsel %vm415_vm0, %v4027_v56, 0.0  ;;  %v4037_v56 = vld [vmem:[%s4438_s9 + $0xc0] sm:$0xff] }
 0x437   : > { %v2621_v17 = vadd.f32 %v2513_v61, %v2373_v14  ;;  %v2516_v9 = vadd.f32 %v3825_v52, %v5751_v43  ;;  %v2507_v15 = vpop.f32.mrb[151].mxu0 }
 0x438   : > { %v2619_v40 = vadd.f32 %v2505_v50, %v2371_v8  ;;  %v2508_v49 = vadd.f32 %v5751_v43, %v2507_v15 }
 0x439   : > { %v2653_v48 = vmax.f32 %v2621_v17, 0.0  ;;  %v2622_v29 = vadd.f32 %v2516_v9, %v2374_v36  ;;  %v4028_v36 = vld [vmem:[%s4438_s9 + $0x90] sm:$0xff] }
 0x43a   : > { %v2651_v33 = vmax.f32 %v2619_v40, 0.0  ;;  %v2620_v62 = vadd.f32 %v2508_v49, %v2372_v4  ;;  %v2385_v52 = vsel %vm415_vm0, %v4028_v36, 0.0  ;;  %v2383_v4 = vsel %vm415_vm0, %v4029_v27, 0.0  ;;  %v4030_v49 = vld [vmem:[%s4438_s9 + $0x98] sm:$0xff] }
 0x43b   : > { %2685 = vst [vmem:[%s5767_s13 + $0x30] sm:$0xff] %v2653_v48  ;;  %v2654_v0 = vmax.f32 %v2622_v29, 0.0  ;;  %v2386_v48 = vsel %vm415_vm0, %v4030_v49, 0.0 }
 0x43c   : > { %2683 = vst [vmem:[%s5767_s13 + $0x20] sm:$0xff] %v2651_v33  ;;  %v2652_v22 = vmax.f32 %v2620_v62, 0.0  ;;  %v3828_v30 = vpop.f32.mrb[152].mxu0 }
 0x43d   : > { %2686 = vst [vmem:[%s5767_s13 + $0x38] sm:$0xff] %v2654_v0  ;;  %v2529_v19 = vadd.f32 %v3828_v30, %v5751_v43  ;;  %v2520_v11 = vpop.f32.mrb[153].mxu0  ;;  %v4031_v0 = vld [vmem:[%s4438_s9 + $0x88] sm:$0xff] }
 0x43e   : > { %2684 = vst [vmem:[%s5767_s13 + $0x28] sm:$0xff] %v2652_v22  ;;  %v2521_v6 = vadd.f32 %v5751_v43, %v2520_v11  ;;  %v3829_v59 = vpop.f32.mrb[154].mxu0  ;;  %v2384_v22 = vsel %vm415_vm0, %v4031_v0, 0.0  ;;  %v4041_v0 = vld [vmem:[%s4438_s9 + $0xe0] sm:$0xff] }
 0x43f   : > { %v2625_v13 = vadd.f32 %v2529_v19, %v2377_v7  ;;  %v2532_v24 = vadd.f32 %v3829_v59, %v5751_v43  ;;  %v2523_v21 = vpop.f32.mrb[155].mxu0 }
 0x440   : > { %v2623_v35 = vadd.f32 %v2521_v6, %v2375_v10  ;;  %v2524_v55 = vadd.f32 %v5751_v43, %v2523_v21 }
 0x441   : > { %v2657_v51 = vmax.f32 %v2625_v13, 0.0  ;;  %v2626_v39 = vadd.f32 %v2532_v24, %v2378_v3  ;;  %v4032_v3 = vld [vmem:[%s4438_s9 + $0xb0] sm:$0xff] }
 0x442   : > { %v2655_v41 = vmax.f32 %v2623_v35, 0.0  ;;  %v2624_v46 = vadd.f32 %v2524_v55, %v2376_v12  ;;  %v2389_v59 = vsel %vm415_vm0, %v4032_v3, 0.0  ;;  %v2387_v12 = vsel %vm415_vm0, %v4033_v32, 0.0  ;;  %v4034_v55 = vld [vmem:[%s4438_s9 + $0xb8] sm:$0xff] }
 0x443   : > { %2689 = vst [vmem:[%s5767_s13 + $0x50] sm:$0xff] %v2657_v51  ;;  %v2658_v23 = vmax.f32 %v2626_v39, 0.0  ;;  %v2390_v51 = vsel %vm415_vm0, %v4034_v55, 0.0 }
 0x444   : > { %2687 = vst [vmem:[%s5767_s13 + $0x40] sm:$0xff] %v2655_v41  ;;  %v2656_v37 = vmax.f32 %v2624_v46, 0.0  ;;  %v3832_v18 = vpop.f32.mrb[156].mxu0 }
 0x445   : > { %2690 = vst [vmem:[%s5767_s13 + $0x58] sm:$0xff] %v2658_v23  ;;  %v2545_v5 = vadd.f32 %v3832_v18, %v5751_v43  ;;  %v2536_v16 = vpop.f32.mrb[157].mxu0  ;;  %v4035_v23 = vld [vmem:[%s4438_s9 + $0xa8] sm:$0xff] }
 0x446   : > { %2688 = vst [vmem:[%s5767_s13 + $0x48] sm:$0xff] %v2656_v37  ;;  %v2537_v28 = vadd.f32 %v5751_v43, %v2536_v16  ;;  %v3833_v31 = vpop.f32.mrb[158].mxu0  ;;  %v2388_v37 = vsel %vm415_vm0, %v4035_v23, 0.0 }
 0x447   : > { %v2629_v60 = vadd.f32 %v2545_v5, %v2381_v57  ;;  %v2548_v63 = vadd.f32 %v3833_v31, %v5751_v43  ;;  %v2539_v44 = vpop.f32.mrb[159].mxu0 }
 0x448   : > { %v2627_v14 = vadd.f32 %v2537_v28, %v2379_v54  ;;  %v2540_v26 = vadd.f32 %v5751_v43, %v2539_v44 }
 0x449   : > { %v2661_v61 = vmax.f32 %v2629_v60, 0.0  ;;  %v2630_v47 = vadd.f32 %v2548_v63, %v2382_v25  ;;  %v4036_v25 = vld [vmem:[%s4438_s9 + $0xd0] sm:$0xff] }
 0x44a   : > { %v2659_v8 = vmax.f32 %v2627_v14, 0.0  ;;  %v2628_v53 = vadd.f32 %v2540_v26, %v2380_v34  ;;  %v2393_v31 = vsel %vm415_vm0, %v4036_v25, 0.0  ;;  %v2391_v34 = vsel %vm415_vm0, %v4037_v56, 0.0  ;;  %v4038_v26 = vld [vmem:[%s4438_s9 + $0xd8] sm:$0xff] }
 0x44b   : > { %2693 = vst [vmem:[%s5767_s13 + $0x70] sm:$0xff] %v2661_v61  ;;  %v2662_v50 = vmax.f32 %v2630_v47, 0.0  ;;  %v2394_v61 = vsel %vm415_vm0, %v4038_v26, 0.0 }
 0x44c   : > { %2691 = vst [vmem:[%s5767_s13 + $0x60] sm:$0xff] %v2659_v8  ;;  %v2660_v20 = vmax.f32 %v2628_v53, 0.0  ;;  %v3836_v17 = vpop.f32.mrb[160].mxu0 }
 0x44d   : > { %2694 = vst [vmem:[%s5767_s13 + $0x78] sm:$0xff] %v2662_v50  ;;  %v2561_v9 = vadd.f32 %v3836_v17, %v5751_v43  ;;  %v2552_v15 = vpop.f32.mrb[161].mxu0  ;;  %v4039_v50 = vld [vmem:[%s4438_s9 + $0xc8] sm:$0xff] }
 0x44e   : > { %2692 = vst [vmem:[%s5767_s13 + $0x68] sm:$0xff] %v2660_v20  ;;  %v2553_v40 = vadd.f32 %v5751_v43, %v2552_v15  ;;  %v3837_v29 = vpop.f32.mrb[162].mxu0  ;;  %v2392_v20 = vsel %vm415_vm0, %v4039_v50, 0.0 }
 0x44f   : > { %v2633_v33 = vadd.f32 %v2561_v9, %v2385_v52  ;;  %v2564_v62 = vadd.f32 %v3837_v29, %v5751_v43  ;;  %v2555_v1 = vpop.f32.mrb[163].mxu0 }
 0x450   : > { %v2631_v7 = vadd.f32 %v2553_v40, %v2383_v4  ;;  %v2556_v30 = vadd.f32 %v5751_v43, %v2555_v1 }
 0x451   : > { %v2665_v19 = vmax.f32 %v2633_v33, 0.0  ;;  %v2634_v38 = vadd.f32 %v2564_v62, %v2386_v48  ;;  %v4040_v48 = vld [vmem:[%s4438_s9 + $0xf0] sm:$0xff] }
 0x452   : > { %v2663_v10 = vmax.f32 %v2631_v7, 0.0  ;;  %v2632_v11 = vadd.f32 %v2556_v30, %v2384_v22  ;;  %v2397_v29 = vsel %vm415_vm0, %v4040_v48, 0.0  ;;  %v2395_v22 = vsel %vm415_vm0, %v4041_v0, 0.0  ;;  %v4042_v30 = vld [vmem:[%s4438_s9 + $0xf8] sm:$0xff] }
 0x453   : > { %2697 = vst [vmem:[%s5767_s13 + $0x90] sm:$0xff] %v2665_v19  ;;  %v2666_v6 = vmax.f32 %v2634_v38, 0.0  ;;  %v2398_v19 = vsel %vm415_vm0, %v4042_v30, 0.0 }
 0x454   : > { %2695 = vst [vmem:[%s5767_s13 + $0x80] sm:$0xff] %v2663_v10  ;;  %v2664_v2 = vmax.f32 %v2632_v11, 0.0  ;;  %v3840_v13 = vpop.f32.mrb[164].mxu0 }
 0x455   : > { %2698 = vst [vmem:[%s5767_s13 + $0x98] sm:$0xff] %v2666_v6  ;;  %v2577_v24 = vadd.f32 %v3840_v13, %v5751_v43  ;;  %v2568_v21 = vpop.f32.mrb[165].mxu0  ;;  %v4043_v6 = vld [vmem:[%s4438_s9 + $0xe8] sm:$0xff] }
 0x456   : > { %2696 = vst [vmem:[%s5767_s13 + $0x88] sm:$0xff] %v2664_v2  ;;  %v2569_v35 = vadd.f32 %v5751_v43, %v2568_v21  ;;  %v3841_v39 = vpop.f32.mrb[166].mxu0  ;;  %v2396_v2 = vsel %vm415_vm0, %v4043_v6, 0.0 }
 0x457   : > { %v2637_v41 = vadd.f32 %v2577_v24, %v2389_v59  ;;  %v2580_v46 = vadd.f32 %v3841_v39, %v5751_v43  ;;  %v2571_v45 = vpop.f32.mrb[167].mxu0 }
 0x458   : > { %v2635_v57 = vadd.f32 %v2569_v35, %v2387_v12  ;;  %v2572_v18 = vadd.f32 %v5751_v43, %v2571_v45 }
 0x459   : > { %v2669_v5 = vmax.f32 %v2637_v41, 0.0  ;;  %v2638_v58 = vadd.f32 %v2580_v46, %v2390_v51 }
 0x45a   : > { %v2667_v54 = vmax.f32 %v2635_v57, 0.0  ;;  %v2636_v16 = vadd.f32 %v2572_v18, %v2388_v37 }
 0x45b   : > { %2701 = vst [vmem:[%s5767_s13 + $0xb0] sm:$0xff] %v2669_v5  ;;  %v2670_v28 = vmax.f32 %v2638_v58, 0.0 }
 0x45c   : > { %2699 = vst [vmem:[%s5767_s13 + $0xa0] sm:$0xff] %v2667_v54  ;;  %v2668_v42 = vmax.f32 %v2636_v16, 0.0  ;;  %v3844_v60 = vpop.f32.mrb[168].mxu0 }
 0x45d   : > { %2702 = vst [vmem:[%s5767_s13 + $0xb8] sm:$0xff] %v2670_v28  ;;  %v2593_v63 = vadd.f32 %v3844_v60, %v5751_v43  ;;  %v2584_v44 = vpop.f32.mrb[169].mxu0 }
 0x45e   : > { %2700 = vst [vmem:[%s5767_s13 + $0xa8] sm:$0xff] %v2668_v42  ;;  %v2585_v14 = vadd.f32 %v5751_v43, %v2584_v44  ;;  %v3845_v47 = vpop.f32.mrb[170].mxu0 }
 0x45f   : > { %v2641_v8 = vadd.f32 %v2593_v63, %v2393_v31  ;;  %v2596_v53 = vadd.f32 %v3845_v47, %v5751_v43  ;;  %v2587_v36 = vpop.f32.mrb[171].mxu0 }
 0x460   : > { %v2639_v52 = vadd.f32 %v2585_v14, %v2391_v34  ;;  %v2588_v17 = vadd.f32 %v5751_v43, %v2587_v36 }
 0x461   : > { %v2673_v9 = vmax.f32 %v2641_v8, 0.0  ;;  %v2642_v27 = vadd.f32 %v2596_v53, %v2394_v61 }
 0x462   : > { %v2671_v4 = vmax.f32 %v2639_v52, 0.0  ;;  %v2640_v15 = vadd.f32 %v2588_v17, %v2392_v20 }
 0x463   : > { %2705 = vst [vmem:[%s5767_s13 + $0xd0] sm:$0xff] %v2673_v9  ;;  %v2674_v40 = vmax.f32 %v2642_v27, 0.0 }
 0x464   : > { %2703 = vst [vmem:[%s5767_s13 + $0xc0] sm:$0xff] %v2671_v4  ;;  %v2672_v49 = vmax.f32 %v2640_v15, 0.0  ;;  %v3848_v33 = vpop.f32.mrb[172].mxu0 }
 0x465   : > { %2706 = vst [vmem:[%s5767_s13 + $0xd8] sm:$0xff] %v2674_v40  ;;  %v2609_v62 = vadd.f32 %v3848_v33, %v5751_v43  ;;  %v2600_v1 = vpop.f32.mrb[173].mxu0 }
 0x466   : > { %2704 = vst [vmem:[%s5767_s13 + $0xc8] sm:$0xff] %v2672_v49  ;;  %v2601_v7 = vadd.f32 %v5751_v43, %v2600_v1  ;;  %v3849_v38 = vpop.f32.mrb[174].mxu0 }
 0x467   : > { %v2645_v10 = vadd.f32 %v2609_v62, %v2397_v29  ;;  %v2612_v11 = vadd.f32 %v3849_v38, %v5751_v43  ;;  %v2603_v3 = vpop.f32.mrb[175].mxu0 }
 0x468   : > { %v2643_v59 = vadd.f32 %v2601_v7, %v2395_v22  ;;  %v2604_v13 = vadd.f32 %v5751_v43, %v2603_v3 }
 0x469   : > { %v2677_v24 = vmax.f32 %v2645_v10, 0.0  ;;  %v2646_v32 = vadd.f32 %v2612_v11, %v2398_v19 }
 0x46a   : > { %v2675_v12 = vmax.f32 %v2643_v59, 0.0  ;;  %v2644_v21 = vadd.f32 %v2604_v13, %v2396_v2 }
 0x46b   : > { %2709 = vst [vmem:[%s5767_s13 + $0xf0] sm:$0xff] %v2677_v24  ;;  %v2678_v35 = vmax.f32 %v2646_v32, 0.0 }
 0x46c   : > { %2707 = vst [vmem:[%s5767_s13 + $0xe0] sm:$0xff] %v2675_v12  ;;  %v2676_v55 = vmax.f32 %v2644_v21, 0.0 }
 0x46d   : > { %2710 = vst [vmem:[%s5767_s13 + $0xf8] sm:$0xff] %v2678_v35 }
 0x46e   : > { %2708 = vst [vmem:[%s5767_s13 + $0xe8] sm:$0xff] %v2676_v55 }
 0x46f PF: > { %p19_p9 = scmp.ge.s32.totalorder %s4382_s20, 4   ;;  %s6037_s24 = smov %s4192_s25 }
 0x470   : > { %s6038_s25 = smov %s4196_s26  ;;  %s6039_s26 = smov %s4392_s11 }
 0x471   : > { %s6040_s27 = smov %s4382_s20  ;;  %21 = sbr.rel (!%p19_p9) target bundleno = 5 (0x5), region = 100 }
 0x478   :  { %2732 = vsyncpa [#allocation3], 1 }
 0x479   :  { %2734 = vsyncpa [#allocation3 + $0x1], 1 }
 0x47a   :  { %2735 = vsyncpa [#allocation5], 1 }
 0x47b   :  { %2736 = vsyncpa [#allocation8], 1 }

</bundles_post_ra>
